<compile_context>
chip_gen: v5e
topology: v5e:2x2
jax: 0.10.0
libtpu: 0.0.40
codegen_flags: <defaults>
</compile_context>

<pallas_src>
import math

import jax
import jax.numpy as jnp
from jax.experimental import pallas as pl
from jax.experimental.pallas import tpu as pltpu

# Small BERT-like config (synthetic deterministic init — no checkpoint load).
B = 2            # batch
S = 8            # sequence length
H = 32           # hidden size
NH = 4           # attention heads
HD = H // NH     # head dim
FF = 64          # intermediate (FFN) size
L = 2            # number of encoder layers
V = 100          # vocab size
MAXPOS = 32      # max position embeddings
EPS = 1e-12      # BERT LayerNorm eps
BS = B * S       # batch folded into the sublane axis
SCALE = 1.0 / math.sqrt(HD)
NEG = -10000.0   # HF-BERT additive mask value

# Lane-dense attention-probability tile: one layer's (NH, BS, BS) probs are
# packed into a single (QROWS, 128) tile so the store is full-lane (no masked
# vst.msk partial stores — matters most on v5e's single vector-store slot).
QROWS = 8
QGROUPS = BS // QROWS
PROB_LANES = NH * QGROUPS * BS
assert BS % QROWS == 0 and PROB_LANES == 128


def _layernorm(x, g, b):
    mu = jnp.mean(x, axis=-1, keepdims=True)
    var = jnp.mean((x - mu) ** 2, axis=-1, keepdims=True)
    return (x - mu) * jax.lax.rsqrt(var + EPS) * g + b


def _erf(x):
    # Abramowitz & Stegun 7.1.26 polynomial (|err| < 1.5e-7): exact-GELU parity
    # without relying on a lax.erf lowering inside Mosaic (exp/VPU ops only).
    a1, a2, a3, a4, a5 = (0.254829592, -0.284496736, 1.421413741,
                          -1.453152027, 1.061405429)
    t = 1.0 / (1.0 + 0.3275911 * jnp.abs(x))
    poly = ((((a5 * t + a4) * t + a3) * t + a2) * t + a1) * t
    y = 1.0 - poly * jnp.exp(-x * x)
    return jnp.where(x >= 0.0, y, -y)


def _gelu(x):
    return 0.5 * x * (1.0 + _erf(x * 0.7071067811865475))


# ------------------------------ Pallas kernel ---------------------------------
# One grid step == one encoder layer.  Inputs with constant index maps (emb, pos
# +type, bias, embedding-LN params) stay VMEM-resident; per-layer weights are
# selected with index_map lambda l: (l, 0, 0) and stream through the pipeline.
# The encoder state is carried in enc_ref (constant output block index).

def bert_encoder_kernel(emb_ref, pt_ref, bias_ref, eg_ref, eb_ref,
                        wqkv_ref, bqkv_ref, wo_ref, bo_ref, l1g_ref, l1b_ref,
                        w1_ref, b1_ref, w2_ref, b2_ref, l2g_ref, l2b_ref,
                        enc_ref, probs_ref):
    l = pl.program_id(0)

    # Embedding sum + LayerNorm only on the first layer step.
    @pl.when(l == 0)
    def _():
        enc_ref[...] = _layernorm(emb_ref[...] + pt_ref[...],
                                  eg_ref[...], eb_ref[...])

    x = enc_ref[...]                                                    # (BS, H)

    # ---- attention: one full-width fused QKV matmul (1/sqrt(HD) pre-folded) --
    qkv = jnp.dot(x, wqkv_ref[0], preferred_element_type=jnp.float32) + bqkv_ref[0]

    def heads(base):
        # Lane slices + leading-axis stack: heads go to a leading batch axis
        # without broadcasting x to (NH, BS, H) and without 3-D transposes.
        return jnp.stack([qkv[:, base + n * HD: base + (n + 1) * HD]
                          for n in range(NH)], axis=0)                 # (NH,BS,HD)

    qh, kh, vh = heads(0), heads(H), heads(2 * H)

    # Per-head scores over all folded keys; bias is already (NH, BS, BS)
    # (block-diagonal cross-batch + key-padding mask) so no in-kernel broadcast.
    s = jnp.einsum('nqd,nkd->nqk', qh, kh,
                   preferred_element_type=jnp.float32) + bias_ref[...]
    s = s - jnp.max(s, axis=-1, keepdims=True)
    e = jnp.exp(s)
    denom = jnp.sum(e, axis=-1, keepdims=True)
    inv = pl.reciprocal(denom, approx=True)       # EUP slot (free next to exp)
    inv = inv * (2.0 - denom * inv)               # one Newton step: keeps 1e-5 parity
    p = e * inv                                                          # (NH,BS,BS)

    # Lane-dense probs store: pack (NH, BS, BS) into a single (QROWS, 128) tile
    # via aligned sublane slices + one minor-dim concat; unpacked in the wrapper.
    pieces = [p[n, g * QROWS:(g + 1) * QROWS, :]
              for n in range(NH) for g in range(QGROUPS)]
    probs_ref[0] = jnp.concatenate(pieces, axis=-1)                      # (8,128)

    # Context per head, heads re-packed contiguously on the lane axis, then one
    # full-width (BS,H)@(H,H) output projection (no per-head sum tree).
    ctx = jnp.einsum('nqk,nkd->nqd', p, vh, preferred_element_type=jnp.float32)
    ctx2d = jnp.concatenate([ctx[n] for n in range(NH)], axis=-1)        # (BS, H)
    attn = jnp.dot(ctx2d, wo_ref[0], preferred_element_type=jnp.float32) + bo_ref[0]

    # ---- residual + LN, GELU FFN, residual + LN ----
    h1 = _layernorm(attn + x, l1g_ref[0], l1b_ref[0])
    inter = _gelu(jnp.dot(h1, w1_ref[0], preferred_element_type=jnp.float32)
                  + b1_ref[0])
    out = jnp.dot(inter, w2_ref[0], preferred_element_type=jnp.float32) + b2_ref[0]
    enc_ref[...] = _layernorm(out + h1, l2g_ref[0], l2b_ref[0])


# ------------------------------ wrapper ---------------------------------------

@jax.jit
def clinical_bert_forward(params, token_ids, attention_mask):
    # Glue (plain JAX): data-dependent embedding gather, constant hoists, and
    # output layout plumbing.  Everything else runs inside the Pallas kernel.
    we = params['word_emb'][token_ids].reshape(BS, H)                    # (BS,H)
    pt = jnp.tile(params['pos_emb'][:S] + params['type_emb'][0][None, :], (B, 1))

    # Additive attention bias over the folded batch: -1e4 for cross-batch key
    # pairs and for padded keys; 0 otherwise.  Broadcast to (NH, BS, BS) here so
    # the kernel never re-emits a broadcast.
    m = attention_mask.astype(jnp.float32)                               # (B,S)
    key_bias = (1.0 - m) * NEG                                           # (B,S)
    cross = (1.0 - jnp.eye(B, dtype=jnp.float32)) * NEG                  # (B,B)
    bias = jnp.broadcast_to(cross[:, None, :, None] + key_bias[None, None, :, :],
                            (B, S, B, S)).reshape(BS, BS)
    bias_nh = jnp.broadcast_to(bias[None], (NH, BS, BS))

    st = params['stack']
    enc, probs = pl.pallas_call(
        bert_encoder_kernel,
        out_shape=(jax.ShapeDtypeStruct((BS, H), jnp.float32),
                   jax.ShapeDtypeStruct((L, QROWS, PROB_LANES), jnp.float32)),
        grid_spec=pltpu.PrefetchScalarGridSpec(
            num_scalar_prefetch=0,
            grid=(L,),
            in_specs=[
                pl.BlockSpec((BS, H), lambda l: (0, 0)),             # word emb (resident)
                pl.BlockSpec((BS, H), lambda l: (0, 0)),             # pos+type  (resident)
                pl.BlockSpec((NH, BS, BS), lambda l: (0, 0, 0)),     # attn bias (resident)
                pl.BlockSpec((1, H), lambda l: (0, 0)),              # emb LN gamma
                pl.BlockSpec((1, H), lambda l: (0, 0)),              # emb LN beta
                pl.BlockSpec((1, H, 3 * H), lambda l: (l, 0, 0)),    # fused QKV weight
                pl.BlockSpec((1, 1, 3 * H), lambda l: (l, 0, 0)),    # fused QKV bias
                pl.BlockSpec((1, H, H), lambda l: (l, 0, 0)),        # out-proj weight
                pl.BlockSpec((1, 1, H), lambda l: (l, 0, 0)),        # out-proj bias
                pl.BlockSpec((1, 1, H), lambda l: (l, 0, 0)),        # LN1 gamma
                pl.BlockSpec((1, 1, H), lambda l: (l, 0, 0)),        # LN1 beta
                pl.BlockSpec((1, H, FF), lambda l: (l, 0, 0)),       # FFN w1
                pl.BlockSpec((1, 1, FF), lambda l: (l, 0, 0)),       # FFN b1
                pl.BlockSpec((1, FF, H), lambda l: (l, 0, 0)),       # FFN w2
                pl.BlockSpec((1, 1, H), lambda l: (l, 0, 0)),        # FFN b2
                pl.BlockSpec((1, 1, H), lambda l: (l, 0, 0)),        # LN2 gamma
                pl.BlockSpec((1, 1, H), lambda l: (l, 0, 0)),        # LN2 beta
            ],
            out_specs=[
                pl.BlockSpec((BS, H), lambda l: (0, 0)),                   # encodings (carried)
                pl.BlockSpec((1, QROWS, PROB_LANES), lambda l: (l, 0, 0)),  # per-layer probs
            ],
        ),
        compiler_params=pltpu.CompilerParams(
            # Layers are sequential (enc is a carried accumulator).
            # TODO(synk): at production shapes add a leading "parallel" batch /
            # query-tile axis so both v7x TensorCores get work.
            dimension_semantics=("arbitrary",),
        ),
    )(we, pt, bias_nh, params['emb_ln_g'], params['emb_ln_b'],
      st['wqkv'], st['bqkv'], st['wo'], st['bo'], st['ln1g'], st['ln1b'],
      st['w1'], st['b1'], st['w2'], st['b2'], st['ln2g'], st['ln2b'])

    encodings = enc.reshape(B, S, H)

    # Unpack the lane-dense tiles: tile[r, (n*QGROUPS+g)*BS + k] = p[n, g*QROWS+r, k]
    p5 = probs.reshape(L, QROWS, NH, QGROUPS, BS)
    p_full = p5.transpose(0, 2, 3, 1, 4).reshape(L, NH, BS, BS)
    # Keep the block-diagonal (query batch == key batch) of the folded layout.
    p6 = p_full.reshape(L, NH, B, S, B, S)
    bidx = jnp.arange(B)
    self_attentions = p6[:, :, bidx, :, bidx, :]          # (B, L, NH, S, S)
    return encodings, self_attentions


# ------------------------------ parameters ------------------------------------

def init_params(key):
    kit = iter(jax.random.split(key, 64))

    def nrm(shape):
        return 0.02 * jax.random.normal(next(kit), shape, jnp.float32)

    params = {
        'word_emb': nrm((V, H)),
        'pos_emb': nrm((MAXPOS, H)),
        'type_emb': nrm((2, H)),
        'emb_ln_g': 1.0 + nrm((1, H)),
        'emb_ln_b': nrm((1, H)),
        'layers': [],
    }
    stack = {k: [] for k in ('wqkv', 'bqkv', 'wo', 'bo', 'ln1g', 'ln1b',
                             'w1', 'b1', 'w2', 'b2', 'ln2g', 'ln2b')}
    for _ in range(L):
        wq, wk, wv, wo = nrm((H, H)), nrm((H, H)), nrm((H, H)), nrm((H, H))
        bq, bk, bv, bo = nrm((H,)), nrm((H,)), nrm((H,)), nrm((H,))
        w1, b1 = nrm((H, FF)), nrm((FF,))
        w2, b2 = nrm((FF, H)), nrm((H,))
        ln1g, ln1b = 1.0 + nrm((1, H)), nrm((1, H))
        ln2g, ln2b = 1.0 + nrm((1, H)), nrm((1, H))
        # Full matrices: used by the pure-JAX reference.
        params['layers'].append(dict(
            wq=wq, wk=wk, wv=wv, wo=wo, bq=bq, bk=bk, bv=bv, bo=bo,
            w1=w1, b1=b1, w2=w2, b2=b2,
            ln1g=ln1g, ln1b=ln1b, ln2g=ln2g, ln2b=ln2b))
        # Kernel packing: fused (H, 3H) QKV with 1/sqrt(HD) folded into Q; the
        # natural head-major column order matches the reference head split.
        stack['wqkv'].append(jnp.concatenate([wq * SCALE, wk, wv], axis=1))
        stack['bqkv'].append(jnp.concatenate([bq * SCALE, bk, bv]).reshape(1, 3 * H))
        stack['wo'].append(wo)
        stack['bo'].append(bo.reshape(1, H))
        stack['ln1g'].append(ln1g)
        stack['ln1b'].append(ln1b)
        stack['w1'].append(w1)
        stack['b1'].append(b1.reshape(1, FF))
        stack['w2'].append(w2)
        stack['b2'].append(b2.reshape(1, H))
        stack['ln2g'].append(ln2g)
        stack['ln2b'].append(ln2b)
    params['stack'] = {k: jnp.stack(v, axis=0) for k, v in stack.items()}
    return params


# ------------------------------ pure-JAX reference ----------------------------

def reference_forward(params, token_ids, attention_mask):
    x = (params['word_emb'][token_ids]
         + params['pos_emb'][:S][None]
         + params['type_emb'][0][None, None])
    x = _layernorm(x, params['emb_ln_g'], params['emb_ln_b'])
    mask_bias = (1.0 - attention_mask.astype(jnp.float32))[:, None, None, :] * NEG
    all_probs = []
    for lp in params['layers']:
        q = x @ lp['wq'] + lp['bq']
        k = x @ lp['wk'] + lp['bk']
        v = x @ lp['wv'] + lp['bv']

        def split(t):
            return t.reshape(B, S, NH, HD).transpose(0, 2, 1, 3)

        qh, kh, vh = split(q), split(k), split(v)
        scores = jnp.einsum('bhqd,bhkd->bhqk', qh, kh) * SCALE + mask_bias
        probs = jax.nn.softmax(scores, axis=-1)
        all_probs.append(probs)
        ctx = jnp.einsum('bhqk,bhkd->bhqd', probs, vh)
        ctx = ctx.transpose(0, 2, 1, 3).reshape(B, S, H)
        attn = ctx @ lp['wo'] + lp['bo']
        h1 = _layernorm(attn + x, lp['ln1g'], lp['ln1b'])
        inter = _gelu(h1 @ lp['w1'] + lp['b1'])
        out = inter @ lp['w2'] + lp['b2']
        x = _layernorm(out + h1, lp['ln2g'], lp['ln2b'])
    return x, jnp.stack(all_probs, axis=1)


if __name__ == "__main__":
    key = jax.random.PRNGKey(0)
    pkey, tkey = jax.random.split(key)
    params = init_params(pkey)

    token_ids = jax.random.randint(tkey, (B, S), 0, V, dtype=jnp.int32)
    attention_mask = jnp.array([[1] * S, [1] * (S - 2) + [0, 0]], dtype=jnp.int32)

    encodings, self_attentions = clinical_bert_forward(params, token_ids, attention_mask)
    jax.block_until_ready((encodings, self_attentions))

    assert encodings.shape == (B, S, H)
    assert self_attentions.shape == (B, L, NH, S, S)

    enc_ref, attn_ref = reference_forward(params, token_ids, attention_mask)
    assert jnp.allclose(encodings, enc_ref, atol=1e-4, rtol=1e-4)
    assert jnp.allclose(self_attentions, attn_ref, atol=1e-5, rtol=1e-4)

    print("KERNEL_OK")
</pallas_src>

<mosaic_0001>
module attributes {stable_mosaic.version = 11 : i64} {
  func.func @bert_encoder_kernel(%arg0: i32, %arg1: memref<16x32xf32, #tpu.memory_space<vmem>>, %arg2: memref<16x32xf32, #tpu.memory_space<vmem>>, %arg3: memref<4x16x16xf32, #tpu.memory_space<vmem>>, %arg4: memref<1x32xf32, #tpu.memory_space<vmem>>, %arg5: memref<1x32xf32, #tpu.memory_space<vmem>>, %arg6: memref<1x32x96xf32, #tpu.memory_space<vmem>>, %arg7: memref<1x1x96xf32, #tpu.memory_space<vmem>>, %arg8: memref<1x32x32xf32, #tpu.memory_space<vmem>>, %arg9: memref<1x1x32xf32, #tpu.memory_space<vmem>>, %arg10: memref<1x1x32xf32, #tpu.memory_space<vmem>>, %arg11: memref<1x1x32xf32, #tpu.memory_space<vmem>>, %arg12: memref<1x32x64xf32, #tpu.memory_space<vmem>>, %arg13: memref<1x1x64xf32, #tpu.memory_space<vmem>>, %arg14: memref<1x64x32xf32, #tpu.memory_space<vmem>>, %arg15: memref<1x1x32xf32, #tpu.memory_space<vmem>>, %arg16: memref<1x1x32xf32, #tpu.memory_space<vmem>>, %arg17: memref<1x1x32xf32, #tpu.memory_space<vmem>>, %arg18: memref<16x32xf32, #tpu.memory_space<vmem>>, %arg19: memref<1x8x128xf32, #tpu.memory_space<vmem>>) attributes {dimension_semantics = [#tpu.dimension_semantics<arbitrary>], iteration_bounds = array<i64: 2>, scalar_prefetch = 0 : i64, scratch_operands = 0 : i64, tpu.core_type = #tpu.core_type<tc>, window_params = [{pipeline_mode = #tpu.pipeline_mode<synchronous>, transform_indices = @transform_0, window_bounds = array<i64: 16, 32>}, {pipeline_mode = #tpu.pipeline_mode<synchronous>, transform_indices = @transform_1, window_bounds = array<i64: 16, 32>}, {pipeline_mode = #tpu.pipeline_mode<synchronous>, transform_indices = @transform_2, window_bounds = array<i64: 4, 16, 16>}, {pipeline_mode = #tpu.pipeline_mode<synchronous>, transform_indices = @transform_3, window_bounds = array<i64: 1, 32>}, {pipeline_mode = #tpu.pipeline_mode<synchronous>, transform_indices = @transform_4, window_bounds = array<i64: 1, 32>}, {transform_indices = @transform_5, window_bounds = array<i64: 1, 32, 96>}, {transform_indices = @transform_6, window_bounds = array<i64: 1, 1, 96>}, {transform_indices = @transform_7, window_bounds = array<i64: 1, 32, 32>}, {transform_indices = @transform_8, window_bounds = array<i64: 1, 1, 32>}, {transform_indices = @transform_9, window_bounds = array<i64: 1, 1, 32>}, {transform_indices = @transform_10, window_bounds = array<i64: 1, 1, 32>}, {transform_indices = @transform_11, window_bounds = array<i64: 1, 32, 64>}, {transform_indices = @transform_12, window_bounds = array<i64: 1, 1, 64>}, {transform_indices = @transform_13, window_bounds = array<i64: 1, 64, 32>}, {transform_indices = @transform_14, window_bounds = array<i64: 1, 1, 32>}, {transform_indices = @transform_15, window_bounds = array<i64: 1, 1, 32>}, {transform_indices = @transform_16, window_bounds = array<i64: 1, 1, 32>}, {pipeline_mode = #tpu.pipeline_mode<synchronous>, transform_indices = @transform_17, window_bounds = array<i64: 16, 32>}, {transform_indices = @transform_18, window_bounds = array<i64: 1, 8, 128>}]} {
    %c0_i32 = arith.constant 0 : i32
    %0 = arith.cmpi eq, %arg0, %c0_i32 : i32
    %1 = arith.extui %0 : i1 to i32
    %c0_i32_0 = arith.constant 0 : i32
    %2 = arith.cmpi ne, %1, %c0_i32_0 : i32
    scf.if %2 {
      %c0_79 = arith.constant 0 : index
      %c0_80 = arith.constant 0 : index
      %201 = vector.load %arg1[%c0_79, %c0_80] : memref<16x32xf32, #tpu.memory_space<vmem>>, vector<16x32xf32>
      %c0_81 = arith.constant 0 : index
      %c0_82 = arith.constant 0 : index
      %202 = vector.load %arg2[%c0_81, %c0_82] : memref<16x32xf32, #tpu.memory_space<vmem>>, vector<16x32xf32>
      %203 = arith.addf %201, %202 : vector<16x32xf32>
      %c0_83 = arith.constant 0 : index
      %c0_84 = arith.constant 0 : index
      %204 = vector.load %arg4[%c0_83, %c0_84] : memref<1x32xf32, #tpu.memory_space<vmem>>, vector<1x32xf32>
      %c0_85 = arith.constant 0 : index
      %c0_86 = arith.constant 0 : index
      %205 = vector.load %arg5[%c0_85, %c0_86] : memref<1x32xf32, #tpu.memory_space<vmem>>, vector<1x32xf32>
      %cst_87 = arith.constant dense<0.000000e+00> : vector<16xf32>
      %206 = vector.multi_reduction <add>, %203, %cst_87 [1] : vector<16x32xf32> to vector<16xf32>
      %207 = vector.shape_cast %206 : vector<16xf32> to vector<16x1xf32>
      %cst_88 = arith.constant 3.200000e+01 : f32
      %208 = vector.broadcast %cst_88 : f32 to vector<16x1xf32>
      %209 = arith.divf %207, %208 : vector<16x1xf32>
      %210 = vector.broadcast %209 : vector<16x1xf32> to vector<16x32xf32>
      %211 = arith.subf %203, %210 : vector<16x32xf32>
      %212 = arith.mulf %211, %211 : vector<16x32xf32>
      %cst_89 = arith.constant dense<0.000000e+00> : vector<16xf32>
      %213 = vector.multi_reduction <add>, %212, %cst_89 [1] : vector<16x32xf32> to vector<16xf32>
      %214 = vector.shape_cast %213 : vector<16xf32> to vector<16x1xf32>
      %cst_90 = arith.constant 3.200000e+01 : f32
      %215 = vector.broadcast %cst_90 : f32 to vector<16x1xf32>
      %216 = arith.divf %214, %215 : vector<16x1xf32>
      %217 = vector.broadcast %209 : vector<16x1xf32> to vector<16x32xf32>
      %218 = arith.subf %203, %217 : vector<16x32xf32>
      %cst_91 = arith.constant 9.99999996E-13 : f32
      %219 = vector.broadcast %cst_91 : f32 to vector<16x1xf32>
      %220 = arith.addf %216, %219 : vector<16x1xf32>
      %221 = math.rsqrt %220 : vector<16x1xf32>
      %222 = vector.broadcast %221 : vector<16x1xf32> to vector<16x32xf32>
      %223 = arith.mulf %218, %222 : vector<16x32xf32>
      %224 = vector.broadcast %204 : vector<1x32xf32> to vector<16x32xf32>
      %225 = arith.mulf %223, %224 : vector<16x32xf32>
      %226 = vector.broadcast %205 : vector<1x32xf32> to vector<16x32xf32>
      %227 = arith.addf %225, %226 : vector<16x32xf32>
      %c0_92 = arith.constant 0 : index
      %c0_93 = arith.constant 0 : index
      %228 = vector.load %arg18[%c0_92, %c0_93] : memref<16x32xf32, #tpu.memory_space<vmem>>, vector<16x32xf32>
      tpu.vector_store %arg18[%c0_92, %c0_93], %227 {strides = array<i32>} : memref<16x32xf32, #tpu.memory_space<vmem>>, vector<16x32xf32>,
    } else {
    }
    %c0 = arith.constant 0 : index
    %c0_1 = arith.constant 0 : index
    %3 = vector.load %arg18[%c0, %c0_1] : memref<16x32xf32, #tpu.memory_space<vmem>>, vector<16x32xf32>
    %c0_2 = arith.constant 0 : index
    %c0_3 = arith.constant 0 : index
    %c0_4 = arith.constant 0 : index
    %4 = vector.load %arg6[%c0_2, %c0_3, %c0_4] : memref<1x32x96xf32, #tpu.memory_space<vmem>>, vector<1x32x96xf32>
    %5 = vector.shape_cast %4 : vector<1x32x96xf32> to vector<32x96xf32>
    %cst = arith.constant dense<0.000000e+00> : vector<16x96xf32>
    %6 = tpu.matmul %3, %5, %cst {dimension_numbers = #tpu.dot_dimension_numbers<[1], [0], [0], [1], [0, 0, 1, 1], [], []>} : vector<16x32xf32>, vector<32x96xf32>, vector<16x96xf32> -> vector<16x96xf32>
    %c0_5 = arith.constant 0 : index
    %c0_6 = arith.constant 0 : index
    %c0_7 = arith.constant 0 : index
    %7 = vector.load %arg7[%c0_5, %c0_6, %c0_7] : memref<1x1x96xf32, #tpu.memory_space<vmem>>, vector<1x1x96xf32>
    %8 = vector.shape_cast %7 : vector<1x1x96xf32> to vector<1x96xf32>
    %9 = vector.broadcast %8 : vector<1x96xf32> to vector<16x96xf32>
    %10 = arith.addf %6, %9 : vector<16x96xf32>
    %11 = vector.extract_strided_slice %10 {offsets = [0, 0], sizes = [16, 8], strides = [1, 1]} : vector<16x96xf32> to vector<16x8xf32>
    %12 = vector.extract_strided_slice %10 {offsets = [0, 8], sizes = [16, 8], strides = [1, 1]} : vector<16x96xf32> to vector<16x8xf32>
    %13 = vector.extract_strided_slice %10 {offsets = [0, 16], sizes = [16, 8], strides = [1, 1]} : vector<16x96xf32> to vector<16x8xf32>
    %14 = vector.extract_strided_slice %10 {offsets = [0, 24], sizes = [16, 8], strides = [1, 1]} : vector<16x96xf32> to vector<16x8xf32>
    %15 = vector.shape_cast %11 : vector<16x8xf32> to vector<1x16x8xf32>
    %16 = vector.shape_cast %12 : vector<16x8xf32> to vector<1x16x8xf32>
    %17 = vector.shape_cast %13 : vector<16x8xf32> to vector<1x16x8xf32>
    %18 = vector.shape_cast %14 : vector<16x8xf32> to vector<1x16x8xf32>
    %19 = tpu.concatenate %15, %16, %17, %18 in 0 : vector<1x16x8xf32>, vector<1x16x8xf32>, vector<1x16x8xf32>, vector<1x16x8xf32> -> vector<4x16x8xf32>
    %20 = vector.extract_strided_slice %10 {offsets = [0, 32], sizes = [16, 8], strides = [1, 1]} : vector<16x96xf32> to vector<16x8xf32>
    %21 = vector.extract_strided_slice %10 {offsets = [0, 40], sizes = [16, 8], strides = [1, 1]} : vector<16x96xf32> to vector<16x8xf32>
    %22 = vector.extract_strided_slice %10 {offsets = [0, 48], sizes = [16, 8], strides = [1, 1]} : vector<16x96xf32> to vector<16x8xf32>
    %23 = vector.extract_strided_slice %10 {offsets = [0, 56], sizes = [16, 8], strides = [1, 1]} : vector<16x96xf32> to vector<16x8xf32>
    %24 = vector.shape_cast %20 : vector<16x8xf32> to vector<1x16x8xf32>
    %25 = vector.shape_cast %21 : vector<16x8xf32> to vector<1x16x8xf32>
    %26 = vector.shape_cast %22 : vector<16x8xf32> to vector<1x16x8xf32>
    %27 = vector.shape_cast %23 : vector<16x8xf32> to vector<1x16x8xf32>
    %28 = tpu.concatenate %24, %25, %26, %27 in 0 : vector<1x16x8xf32>, vector<1x16x8xf32>, vector<1x16x8xf32>, vector<1x16x8xf32> -> vector<4x16x8xf32>
    %29 = vector.extract_strided_slice %10 {offsets = [0, 64], sizes = [16, 8], strides = [1, 1]} : vector<16x96xf32> to vector<16x8xf32>
    %30 = vector.extract_strided_slice %10 {offsets = [0, 72], sizes = [16, 8], strides = [1, 1]} : vector<16x96xf32> to vector<16x8xf32>
    %31 = vector.extract_strided_slice %10 {offsets = [0, 80], sizes = [16, 8], strides = [1, 1]} : vector<16x96xf32> to vector<16x8xf32>
    %32 = vector.extract_strided_slice %10 {offsets = [0, 88], sizes = [16, 8], strides = [1, 1]} : vector<16x96xf32> to vector<16x8xf32>
    %33 = vector.shape_cast %29 : vector<16x8xf32> to vector<1x16x8xf32>
    %34 = vector.shape_cast %30 : vector<16x8xf32> to vector<1x16x8xf32>
    %35 = vector.shape_cast %31 : vector<16x8xf32> to vector<1x16x8xf32>
    %36 = vector.shape_cast %32 : vector<16x8xf32> to vector<1x16x8xf32>
    %37 = tpu.concatenate %33, %34, %35, %36 in 0 : vector<1x16x8xf32>, vector<1x16x8xf32>, vector<1x16x8xf32>, vector<1x16x8xf32> -> vector<4x16x8xf32>
    "tpu.trace_start"() <{level = 10 : i32, message = "nqd,nkd->nqk"}> : () -> ()
    %cst_8 = arith.constant dense<0.000000e+00> : vector<4x16x16xf32>
    %38 = tpu.matmul %19, %28, %cst_8 {dimension_numbers = #tpu.dot_dimension_numbers<[2], [2], [1], [1], [0, 0, 0, 1, 1, 1], [0], [0]>} : vector<4x16x8xf32>, vector<4x16x8xf32>, vector<4x16x16xf32> -> vector<4x16x16xf32>
    "tpu.trace_stop"() : () -> ()
    %c0_9 = arith.constant 0 : index
    %c0_10 = arith.constant 0 : index
    %c0_11 = arith.constant 0 : index
    %39 = vector.load %arg3[%c0_9, %c0_10, %c0_11] : memref<4x16x16xf32, #tpu.memory_space<vmem>>, vector<4x16x16xf32>
    %40 = arith.addf %38, %39 : vector<4x16x16xf32>
    %cst_12 = arith.constant dense<0xFF800000> : vector<4x16xf32>
    %41 = vector.multi_reduction <maximumf>, %40, %cst_12 [2] : vector<4x16x16xf32> to vector<4x16xf32>
    %42 = vector.shape_cast %41 : vector<4x16xf32> to vector<4x16x1xf32>
    %43 = vector.broadcast %42 : vector<4x16x1xf32> to vector<4x16x16xf32>
    %44 = arith.subf %40, %43 : vector<4x16x16xf32>
    %45 = math.exp %44 : vector<4x16x16xf32>
    %cst_13 = arith.constant dense<0.000000e+00> : vector<4x16xf32>
    %46 = vector.multi_reduction <add>, %45, %cst_13 [2] : vector<4x16x16xf32> to vector<4x16xf32>
    %47 = vector.shape_cast %46 : vector<4x16xf32> to vector<4x16x1xf32>
    %48 = tpu.reciprocal %47 {approx = true} : vector<4x16x1xf32> -> vector<4x16x1xf32>
    %49 = arith.mulf %47, %48 : vector<4x16x1xf32>
    %cst_14 = arith.constant 2.000000e+00 : f32
    %50 = vector.broadcast %cst_14 : f32 to vector<4x16x1xf32>
    %51 = arith.subf %50, %49 : vector<4x16x1xf32>
    %52 = arith.mulf %48, %51 : vector<4x16x1xf32>
    %53 = vector.broadcast %52 : vector<4x16x1xf32> to vector<4x16x16xf32>
    %54 = arith.mulf %45, %53 : vector<4x16x16xf32>
    %55 = vector.extract_strided_slice %54 {offsets = [0, 0, 0], sizes = [1, 8, 16], strides = [1, 1, 1]} : vector<4x16x16xf32> to vector<1x8x16xf32>
    %56 = vector.shape_cast %55 : vector<1x8x16xf32> to vector<8x16xf32>
    %57 = vector.extract_strided_slice %54 {offsets = [0, 8, 0], sizes = [1, 8, 16], strides = [1, 1, 1]} : vector<4x16x16xf32> to vector<1x8x16xf32>
    %58 = vector.shape_cast %57 : vector<1x8x16xf32> to vector<8x16xf32>
    %59 = vector.extract_strided_slice %54 {offsets = [1, 0, 0], sizes = [1, 8, 16], strides = [1, 1, 1]} : vector<4x16x16xf32> to vector<1x8x16xf32>
    %60 = vector.shape_cast %59 : vector<1x8x16xf32> to vector<8x16xf32>
    %61 = vector.extract_strided_slice %54 {offsets = [1, 8, 0], sizes = [1, 8, 16], strides = [1, 1, 1]} : vector<4x16x16xf32> to vector<1x8x16xf32>
    %62 = vector.shape_cast %61 : vector<1x8x16xf32> to vector<8x16xf32>
    %63 = vector.extract_strided_slice %54 {offsets = [2, 0, 0], sizes = [1, 8, 16], strides = [1, 1, 1]} : vector<4x16x16xf32> to vector<1x8x16xf32>
    %64 = vector.shape_cast %63 : vector<1x8x16xf32> to vector<8x16xf32>
    %65 = vector.extract_strided_slice %54 {offsets = [2, 8, 0], sizes = [1, 8, 16], strides = [1, 1, 1]} : vector<4x16x16xf32> to vector<1x8x16xf32>
    %66 = vector.shape_cast %65 : vector<1x8x16xf32> to vector<8x16xf32>
    %67 = vector.extract_strided_slice %54 {offsets = [3, 0, 0], sizes = [1, 8, 16], strides = [1, 1, 1]} : vector<4x16x16xf32> to vector<1x8x16xf32>
    %68 = vector.shape_cast %67 : vector<1x8x16xf32> to vector<8x16xf32>
    %69 = vector.extract_strided_slice %54 {offsets = [3, 8, 0], sizes = [1, 8, 16], strides = [1, 1, 1]} : vector<4x16x16xf32> to vector<1x8x16xf32>
    %70 = vector.shape_cast %69 : vector<1x8x16xf32> to vector<8x16xf32>
    %71 = tpu.concatenate %56, %58, %60, %62, %64, %66, %68, %70 in 1 : vector<8x16xf32>, vector<8x16xf32>, vector<8x16xf32>, vector<8x16xf32>, vector<8x16xf32>, vector<8x16xf32>, vector<8x16xf32>, vector<8x16xf32> -> vector<8x128xf32>
    %c0_15 = arith.constant 0 : index
    %c0_16 = arith.constant 0 : index
    %c0_17 = arith.constant 0 : index
    %72 = vector.load %arg19[%c0_15, %c0_16, %c0_17] : memref<1x8x128xf32, #tpu.memory_space<vmem>>, vector<1x8x128xf32>
    %73 = vector.shape_cast %72 : vector<1x8x128xf32> to vector<8x128xf32>
    %74 = vector.shape_cast %71 : vector<8x128xf32> to vector<1x8x128xf32>
    tpu.vector_store %arg19[%c0_15, %c0_16, %c0_17], %74 {strides = array<i32>} : memref<1x8x128xf32, #tpu.memory_space<vmem>>, vector<1x8x128xf32>,
    "tpu.trace_start"() <{level = 10 : i32, message = "nqk,nkd->nqd"}> : () -> ()
    %cst_18 = arith.constant dense<0.000000e+00> : vector<4x16x8xf32>
    %75 = tpu.matmul %54, %37, %cst_18 {dimension_numbers = #tpu.dot_dimension_numbers<[2], [1], [1], [2], [0, 0, 0, 1, 1, 2], [0], [0]>} : vector<4x16x16xf32>, vector<4x16x8xf32>, vector<4x16x8xf32> -> vector<4x16x8xf32>
    "tpu.trace_stop"() : () -> ()
    %76 = vector.extract_strided_slice %75 {offsets = [0, 0, 0], sizes = [1, 16, 8], strides = [1, 1, 1]} : vector<4x16x8xf32> to vector<1x16x8xf32>
    %77 = vector.shape_cast %76 : vector<1x16x8xf32> to vector<16x8xf32>
    %78 = vector.extract_strided_slice %75 {offsets = [1, 0, 0], sizes = [1, 16, 8], strides = [1, 1, 1]} : vector<4x16x8xf32> to vector<1x16x8xf32>
    %79 = vector.shape_cast %78 : vector<1x16x8xf32> to vector<16x8xf32>
    %80 = vector.extract_strided_slice %75 {offsets = [2, 0, 0], sizes = [1, 16, 8], strides = [1, 1, 1]} : vector<4x16x8xf32> to vector<1x16x8xf32>
    %81 = vector.shape_cast %80 : vector<1x16x8xf32> to vector<16x8xf32>
    %82 = vector.extract_strided_slice %75 {offsets = [3, 0, 0], sizes = [1, 16, 8], strides = [1, 1, 1]} : vector<4x16x8xf32> to vector<1x16x8xf32>
    %83 = vector.shape_cast %82 : vector<1x16x8xf32> to vector<16x8xf32>
    %84 = tpu.concatenate %77, %79, %81, %83 in 1 : vector<16x8xf32>, vector<16x8xf32>, vector<16x8xf32>, vector<16x8xf32> -> vector<16x32xf32>
    %c0_19 = arith.constant 0 : index
    %c0_20 = arith.constant 0 : index
    %c0_21 = arith.constant 0 : index
    %85 = vector.load %arg8[%c0_19, %c0_20, %c0_21] : memref<1x32x32xf32, #tpu.memory_space<vmem>>, vector<1x32x32xf32>
    %86 = vector.shape_cast %85 : vector<1x32x32xf32> to vector<32x32xf32>
    %cst_22 = arith.constant dense<0.000000e+00> : vector<16x32xf32>
    %87 = tpu.matmul %84, %86, %cst_22 {dimension_numbers = #tpu.dot_dimension_numbers<[1], [0], [0], [1], [0, 0, 1, 1], [], []>} : vector<16x32xf32>, vector<32x32xf32>, vector<16x32xf32> -> vector<16x32xf32>
    %c0_23 = arith.constant 0 : index
    %c0_24 = arith.constant 0 : index
    %c0_25 = arith.constant 0 : index
    %88 = vector.load %arg9[%c0_23, %c0_24, %c0_25] : memref<1x1x32xf32, #tpu.memory_space<vmem>>, vector<1x1x32xf32>
    %89 = vector.shape_cast %88 : vector<1x1x32xf32> to vector<1x32xf32>
    %90 = vector.broadcast %89 : vector<1x32xf32> to vector<16x32xf32>
    %91 = arith.addf %87, %90 : vector<16x32xf32>
    %92 = arith.addf %91, %3 : vector<16x32xf32>
    %c0_26 = arith.constant 0 : index
    %c0_27 = arith.constant 0 : index
    %c0_28 = arith.constant 0 : index
    %93 = vector.load %arg10[%c0_26, %c0_27, %c0_28] : memref<1x1x32xf32, #tpu.memory_space<vmem>>, vector<1x1x32xf32>
    %94 = vector.shape_cast %93 : vector<1x1x32xf32> to vector<1x32xf32>
    %c0_29 = arith.constant 0 : index
    %c0_30 = arith.constant 0 : index
    %c0_31 = arith.constant 0 : index
    %95 = vector.load %arg11[%c0_29, %c0_30, %c0_31] : memref<1x1x32xf32, #tpu.memory_space<vmem>>, vector<1x1x32xf32>
    %96 = vector.shape_cast %95 : vector<1x1x32xf32> to vector<1x32xf32>
    %cst_32 = arith.constant dense<0.000000e+00> : vector<16xf32>
    %97 = vector.multi_reduction <add>, %92, %cst_32 [1] : vector<16x32xf32> to vector<16xf32>
    %98 = vector.shape_cast %97 : vector<16xf32> to vector<16x1xf32>
    %cst_33 = arith.constant 3.200000e+01 : f32
    %99 = vector.broadcast %cst_33 : f32 to vector<16x1xf32>
    %100 = arith.divf %98, %99 : vector<16x1xf32>
    %101 = vector.broadcast %100 : vector<16x1xf32> to vector<16x32xf32>
    %102 = arith.subf %92, %101 : vector<16x32xf32>
    %103 = arith.mulf %102, %102 : vector<16x32xf32>
    %cst_34 = arith.constant dense<0.000000e+00> : vector<16xf32>
    %104 = vector.multi_reduction <add>, %103, %cst_34 [1] : vector<16x32xf32> to vector<16xf32>
    %105 = vector.shape_cast %104 : vector<16xf32> to vector<16x1xf32>
    %cst_35 = arith.constant 3.200000e+01 : f32
    %106 = vector.broadcast %cst_35 : f32 to vector<16x1xf32>
    %107 = arith.divf %105, %106 : vector<16x1xf32>
    %108 = vector.broadcast %100 : vector<16x1xf32> to vector<16x32xf32>
    %109 = arith.subf %92, %108 : vector<16x32xf32>
    %cst_36 = arith.constant 9.99999996E-13 : f32
    %110 = vector.broadcast %cst_36 : f32 to vector<16x1xf32>
    %111 = arith.addf %107, %110 : vector<16x1xf32>
    %112 = math.rsqrt %111 : vector<16x1xf32>
    %113 = vector.broadcast %112 : vector<16x1xf32> to vector<16x32xf32>
    %114 = arith.mulf %109, %113 : vector<16x32xf32>
    %115 = vector.broadcast %94 : vector<1x32xf32> to vector<16x32xf32>
    %116 = arith.mulf %114, %115 : vector<16x32xf32>
    %117 = vector.broadcast %96 : vector<1x32xf32> to vector<16x32xf32>
    %118 = arith.addf %116, %117 : vector<16x32xf32>
    %c0_37 = arith.constant 0 : index
    %c0_38 = arith.constant 0 : index
    %c0_39 = arith.constant 0 : index
    %119 = vector.load %arg12[%c0_37, %c0_38, %c0_39] : memref<1x32x64xf32, #tpu.memory_space<vmem>>, vector<1x32x64xf32>
    %120 = vector.shape_cast %119 : vector<1x32x64xf32> to vector<32x64xf32>
    %cst_40 = arith.constant dense<0.000000e+00> : vector<16x64xf32>
    %121 = tpu.matmul %118, %120, %cst_40 {dimension_numbers = #tpu.dot_dimension_numbers<[1], [0], [0], [1], [0, 0, 1, 1], [], []>} : vector<16x32xf32>, vector<32x64xf32>, vector<16x64xf32> -> vector<16x64xf32>
    %c0_41 = arith.constant 0 : index
    %c0_42 = arith.constant 0 : index
    %c0_43 = arith.constant 0 : index
    %122 = vector.load %arg13[%c0_41, %c0_42, %c0_43] : memref<1x1x64xf32, #tpu.memory_space<vmem>>, vector<1x1x64xf32>
    %123 = vector.shape_cast %122 : vector<1x1x64xf32> to vector<1x64xf32>
    %124 = vector.broadcast %123 : vector<1x64xf32> to vector<16x64xf32>
    %125 = arith.addf %121, %124 : vector<16x64xf32>
    %cst_44 = arith.constant 5.000000e-01 : f32
    %126 = vector.broadcast %cst_44 : f32 to vector<16x64xf32>
    %127 = arith.mulf %126, %125 : vector<16x64xf32>
    %cst_45 = arith.constant 0.707106769 : f32
    %128 = vector.broadcast %cst_45 : f32 to vector<16x64xf32>
    %129 = arith.mulf %125, %128 : vector<16x64xf32>
    %130 = math.absf %129 : vector<16x64xf32>
    %cst_46 = arith.constant 0.327591091 : f32
    %131 = vector.broadcast %cst_46 : f32 to vector<16x64xf32>
    %132 = arith.mulf %131, %130 : vector<16x64xf32>
    %cst_47 = arith.constant 1.000000e+00 : f32
    %133 = vector.broadcast %cst_47 : f32 to vector<16x64xf32>
    %134 = arith.addf %133, %132 : vector<16x64xf32>
    %cst_48 = arith.constant 1.000000e+00 : f32
    %135 = vector.broadcast %cst_48 : f32 to vector<16x64xf32>
    %136 = arith.divf %135, %134 : vector<16x64xf32>
    %cst_49 = arith.constant 1.06140542 : f32
    %137 = vector.broadcast %cst_49 : f32 to vector<16x64xf32>
    %138 = arith.mulf %137, %136 : vector<16x64xf32>
    %cst_50 = arith.constant -1.45315206 : f32
    %139 = vector.broadcast %cst_50 : f32 to vector<16x64xf32>
    %140 = arith.addf %138, %139 : vector<16x64xf32>
    %141 = arith.mulf %140, %136 : vector<16x64xf32>
    %cst_51 = arith.constant 1.42141378 : f32
    %142 = vector.broadcast %cst_51 : f32 to vector<16x64xf32>
    %143 = arith.addf %141, %142 : vector<16x64xf32>
    %144 = arith.mulf %143, %136 : vector<16x64xf32>
    %cst_52 = arith.constant -0.284496725 : f32
    %145 = vector.broadcast %cst_52 : f32 to vector<16x64xf32>
    %146 = arith.addf %144, %145 : vector<16x64xf32>
    %147 = arith.mulf %146, %136 : vector<16x64xf32>
    %cst_53 = arith.constant 0.254829586 : f32
    %148 = vector.broadcast %cst_53 : f32 to vector<16x64xf32>
    %149 = arith.addf %147, %148 : vector<16x64xf32>
    %150 = arith.mulf %149, %136 : vector<16x64xf32>
    %cst_54 = arith.constant 0.000000e+00 : f32
    %151 = vector.broadcast %cst_54 : f32 to vector<16x64xf32>
    %152 = arith.subf %151, %129 : vector<16x64xf32>
    %153 = arith.mulf %152, %129 : vector<16x64xf32>
    %154 = math.exp %153 : vector<16x64xf32>
    %155 = arith.mulf %150, %154 : vector<16x64xf32>
    %cst_55 = arith.constant 1.000000e+00 : f32
    %156 = vector.broadcast %cst_55 : f32 to vector<16x64xf32>
    %157 = arith.subf %156, %155 : vector<16x64xf32>
    %cst_56 = arith.constant 0.000000e+00 : f32
    %158 = vector.broadcast %cst_56 : f32 to vector<16x64xf32>
    %159 = arith.cmpf oge, %129, %158 : vector<16x64xf32>
    %cst_57 = arith.constant 0.000000e+00 : f32
    %160 = vector.broadcast %cst_57 : f32 to vector<16x64xf32>
    %161 = arith.subf %160, %157 : vector<16x64xf32>
    %162 = arith.select %159, %157, %161 : vector<16x64xi1>, vector<16x64xf32>
    %cst_58 = arith.constant 1.000000e+00 : f32
    %163 = vector.broadcast %cst_58 : f32 to vector<16x64xf32>
    %164 = arith.addf %163, %162 : vector<16x64xf32>
    %165 = arith.mulf %127, %164 : vector<16x64xf32>
    %c0_59 = arith.constant 0 : index
    %c0_60 = arith.constant 0 : index
    %c0_61 = arith.constant 0 : index
    %166 = vector.load %arg14[%c0_59, %c0_60, %c0_61] : memref<1x64x32xf32, #tpu.memory_space<vmem>>, vector<1x64x32xf32>
    %167 = vector.shape_cast %166 : vector<1x64x32xf32> to vector<64x32xf32>
    %cst_62 = arith.constant dense<0.000000e+00> : vector<16x32xf32>
    %168 = tpu.matmul %165, %167, %cst_62 {dimension_numbers = #tpu.dot_dimension_numbers<[1], [0], [0], [1], [0, 0, 1, 1], [], []>} : vector<16x64xf32>, vector<64x32xf32>, vector<16x32xf32> -> vector<16x32xf32>
    %c0_63 = arith.constant 0 : index
    %c0_64 = arith.constant 0 : index
    %c0_65 = arith.constant 0 : index
    %169 = vector.load %arg15[%c0_63, %c0_64, %c0_65] : memref<1x1x32xf32, #tpu.memory_space<vmem>>, vector<1x1x32xf32>
    %170 = vector.shape_cast %169 : vector<1x1x32xf32> to vector<1x32xf32>
    %171 = vector.broadcast %170 : vector<1x32xf32> to vector<16x32xf32>
    %172 = arith.addf %168, %171 : vector<16x32xf32>
    %173 = arith.addf %172, %118 : vector<16x32xf32>
    %c0_66 = arith.constant 0 : index
    %c0_67 = arith.constant 0 : index
    %c0_68 = arith.constant 0 : index
    %174 = vector.load %arg16[%c0_66, %c0_67, %c0_68] : memref<1x1x32xf32, #tpu.memory_space<vmem>>, vector<1x1x32xf32>
    %175 = vector.shape_cast %174 : vector<1x1x32xf32> to vector<1x32xf32>
    %c0_69 = arith.constant 0 : index
    %c0_70 = arith.constant 0 : index
    %c0_71 = arith.constant 0 : index
    %176 = vector.load %arg17[%c0_69, %c0_70, %c0_71] : memref<1x1x32xf32, #tpu.memory_space<vmem>>, vector<1x1x32xf32>
    %177 = vector.shape_cast %176 : vector<1x1x32xf32> to vector<1x32xf32>
    %cst_72 = arith.constant dense<0.000000e+00> : vector<16xf32>
    %178 = vector.multi_reduction <add>, %173, %cst_72 [1] : vector<16x32xf32> to vector<16xf32>
    %179 = vector.shape_cast %178 : vector<16xf32> to vector<16x1xf32>
    %cst_73 = arith.constant 3.200000e+01 : f32
    %180 = vector.broadcast %cst_73 : f32 to vector<16x1xf32>
    %181 = arith.divf %179, %180 : vector<16x1xf32>
    %182 = vector.broadcast %181 : vector<16x1xf32> to vector<16x32xf32>
    %183 = arith.subf %173, %182 : vector<16x32xf32>
    %184 = arith.mulf %183, %183 : vector<16x32xf32>
    %cst_74 = arith.constant dense<0.000000e+00> : vector<16xf32>
    %185 = vector.multi_reduction <add>, %184, %cst_74 [1] : vector<16x32xf32> to vector<16xf32>
    %186 = vector.shape_cast %185 : vector<16xf32> to vector<16x1xf32>
    %cst_75 = arith.constant 3.200000e+01 : f32
    %187 = vector.broadcast %cst_75 : f32 to vector<16x1xf32>
    %188 = arith.divf %186, %187 : vector<16x1xf32>
    %189 = vector.broadcast %181 : vector<16x1xf32> to vector<16x32xf32>
    %190 = arith.subf %173, %189 : vector<16x32xf32>
    %cst_76 = arith.constant 9.99999996E-13 : f32
    %191 = vector.broadcast %cst_76 : f32 to vector<16x1xf32>
    %192 = arith.addf %188, %191 : vector<16x1xf32>
    %193 = math.rsqrt %192 : vector<16x1xf32>
    %194 = vector.broadcast %193 : vector<16x1xf32> to vector<16x32xf32>
    %195 = arith.mulf %190, %194 : vector<16x32xf32>
    %196 = vector.broadcast %175 : vector<1x32xf32> to vector<16x32xf32>
    %197 = arith.mulf %195, %196 : vector<16x32xf32>
    %198 = vector.broadcast %177 : vector<1x32xf32> to vector<16x32xf32>
    %199 = arith.addf %197, %198 : vector<16x32xf32>
    %c0_77 = arith.constant 0 : index
    %c0_78 = arith.constant 0 : index
    %200 = vector.load %arg18[%c0_77, %c0_78] : memref<16x32xf32, #tpu.memory_space<vmem>>, vector<16x32xf32>
    tpu.vector_store %arg18[%c0_77, %c0_78], %199 {strides = array<i32>} : memref<16x32xf32, #tpu.memory_space<vmem>>, vector<16x32xf32>,
    return
  }
  func.func @transform_0(%arg0: i32) -> (i32, i32) {
    %c0_i32 = arith.constant 0 : i32
    %c0_i32_0 = arith.constant 0 : i32
    %c0_i32_1 = arith.constant 0 : i32
    return %c0_i32, %c0_i32_0 : i32, i32
  }
  func.func @transform_1(%arg0: i32) -> (i32, i32) {
    %c0_i32 = arith.constant 0 : i32
    %c0_i32_0 = arith.constant 0 : i32
    %c0_i32_1 = arith.constant 0 : i32
    return %c0_i32, %c0_i32_0 : i32, i32
  }
  func.func @transform_2(%arg0: i32) -> (i32, i32, i32) {
    %c0_i32 = arith.constant 0 : i32
    %c0_i32_0 = arith.constant 0 : i32
    %c0_i32_1 = arith.constant 0 : i32
    %c0_i32_2 = arith.constant 0 : i32
    return %c0_i32, %c0_i32_0, %c0_i32_1 : i32, i32, i32
  }
  func.func @transform_3(%arg0: i32) -> (i32, i32) {
    %c0_i32 = arith.constant 0 : i32
    %c0_i32_0 = arith.constant 0 : i32
    %c0_i32_1 = arith.constant 0 : i32
    return %c0_i32, %c0_i32_0 : i32, i32
  }
  func.func @transform_4(%arg0: i32) -> (i32, i32) {
    %c0_i32 = arith.constant 0 : i32
    %c0_i32_0 = arith.constant 0 : i32
    %c0_i32_1 = arith.constant 0 : i32
    return %c0_i32, %c0_i32_0 : i32, i32
  }
  func.func @transform_5(%arg0: i32) -> (i32, i32, i32) {
    %c0_i32 = arith.constant 0 : i32
    %c0_i32_0 = arith.constant 0 : i32
    %c0_i32_1 = arith.constant 0 : i32
    return %arg0, %c0_i32, %c0_i32_0 : i32, i32, i32
  }
  func.func @transform_6(%arg0: i32) -> (i32, i32, i32) {
    %c0_i32 = arith.constant 0 : i32
    %c0_i32_0 = arith.constant 0 : i32
    %c0_i32_1 = arith.constant 0 : i32
    return %arg0, %c0_i32, %c0_i32_0 : i32, i32, i32
  }
  func.func @transform_7(%arg0: i32) -> (i32, i32, i32) {
    %c0_i32 = arith.constant 0 : i32
    %c0_i32_0 = arith.constant 0 : i32
    %c0_i32_1 = arith.constant 0 : i32
    return %arg0, %c0_i32, %c0_i32_0 : i32, i32, i32
  }
  func.func @transform_8(%arg0: i32) -> (i32, i32, i32) {
    %c0_i32 = arith.constant 0 : i32
    %c0_i32_0 = arith.constant 0 : i32
    %c0_i32_1 = arith.constant 0 : i32
    return %arg0, %c0_i32, %c0_i32_0 : i32, i32, i32
  }
  func.func @transform_9(%arg0: i32) -> (i32, i32, i32) {
    %c0_i32 = arith.constant 0 : i32
    %c0_i32_0 = arith.constant 0 : i32
    %c0_i32_1 = arith.constant 0 : i32
    return %arg0, %c0_i32, %c0_i32_0 : i32, i32, i32
  }
  func.func @transform_10(%arg0: i32) -> (i32, i32, i32) {
    %c0_i32 = arith.constant 0 : i32
    %c0_i32_0 = arith.constant 0 : i32
    %c0_i32_1 = arith.constant 0 : i32
    return %arg0, %c0_i32, %c0_i32_0 : i32, i32, i32
  }
  func.func @transform_11(%arg0: i32) -> (i32, i32, i32) {
    %c0_i32 = arith.constant 0 : i32
    %c0_i32_0 = arith.constant 0 : i32
    %c0_i32_1 = arith.constant 0 : i32
    return %arg0, %c0_i32, %c0_i32_0 : i32, i32, i32
  }
  func.func @transform_12(%arg0: i32) -> (i32, i32, i32) {
    %c0_i32 = arith.constant 0 : i32
    %c0_i32_0 = arith.constant 0 : i32
    %c0_i32_1 = arith.constant 0 : i32
    return %arg0, %c0_i32, %c0_i32_0 : i32, i32, i32
  }
  func.func @transform_13(%arg0: i32) -> (i32, i32, i32) {
    %c0_i32 = arith.constant 0 : i32
    %c0_i32_0 = arith.constant 0 : i32
    %c0_i32_1 = arith.constant 0 : i32
    return %arg0, %c0_i32, %c0_i32_0 : i32, i32, i32
  }
  func.func @transform_14(%arg0: i32) -> (i32, i32, i32) {
    %c0_i32 = arith.constant 0 : i32
    %c0_i32_0 = arith.constant 0 : i32
    %c0_i32_1 = arith.constant 0 : i32
    return %arg0, %c0_i32, %c0_i32_0 : i32, i32, i32
  }
  func.func @transform_15(%arg0: i32) -> (i32, i32, i32) {
    %c0_i32 = arith.constant 0 : i32
    %c0_i32_0 = arith.constant 0 : i32
    %c0_i32_1 = arith.constant 0 : i32
    return %arg0, %c0_i32, %c0_i32_0 : i32, i32, i32
  }
  func.func @transform_16(%arg0: i32) -> (i32, i32, i32) {
    %c0_i32 = arith.constant 0 : i32
    %c0_i32_0 = arith.constant 0 : i32
    %c0_i32_1 = arith.constant 0 : i32
    return %arg0, %c0_i32, %c0_i32_0 : i32, i32, i32
  }
  func.func @transform_17(%arg0: i32) -> (i32, i32) {
    %c0_i32 = arith.constant 0 : i32
    %c0_i32_0 = arith.constant 0 : i32
    %c0_i32_1 = arith.constant 0 : i32
    return %c0_i32, %c0_i32_0 : i32, i32
  }
  func.func @transform_18(%arg0: i32) -> (i32, i32, i32) {
    %c0_i32 = arith.constant 0 : i32
    %c0_i32_0 = arith.constant 0 : i32
    %c0_i32_1 = arith.constant 0 : i32
    return %arg0, %c0_i32, %c0_i32_0 : i32, i32, i32
  }
}

</mosaic_0001>

<bundles_post_ra>
// kernel: clinical_bert_forward.1
= control target key start
LH: loop header
LB: loop body
LE: loop exit
PB: predicated region body
PF: predicated region fallthrough
CT: control target
= control target key end

     0   :  { %s2614_s0 = inlined_call_operand.vmem [shape: f32[16,32], index: 0, kind: input, shape index: {}]   ;;  %s2615_s1 = inlined_call_operand.vmem [shape: f32[16,32], index: 1, kind: input, shape index: {}]   ;;  %s2616_s2 = inlined_call_operand.vmem [shape: f32[4,16,16], index: 2, kind: input, shape index: {}]   ;;  %s2617_s3 = inlined_call_operand.vmem [shape: f32[1,32], index: 3, kind: input, shape index: {}]   ;;  %s2618_s4 = inlined_call_operand.vmem [shape: f32[1,32], index: 4, kind: input, shape index: {}]   ;;  %s2619_s5 = inlined_call_operand.vmem [shape: f32[2,32,96], index: 5, kind: input, shape index: {}]   ;;  %s2620_s6 = inlined_call_operand.vmem [shape: f32[2,1,96], index: 6, kind: input, shape index: {}]   ;;  %s2621_s7 = inlined_call_operand.vmem [shape: f32[2,32,32], index: 7, kind: input, shape index: {}]   ;;  %s2622_s8 = inlined_call_operand.vmem [shape: f32[2,1,32], index: 8, kind: input, shape index: {}]   ;;  %s2623_s9 = inlined_call_operand.vmem [shape: f32[2,1,32], index: 9, kind: input, shape index: {}]   ;;  %s2624_s10 = inlined_call_operand.vmem [shape: f32[2,1,32], index: 10, kind: input, shape index: {}]   ;;  %s2625_s11 = inlined_call_operand.vmem [shape: f32[2,32,64], index: 11, kind: input, shape index: {}]   ;;  %s2626_s12 = inlined_call_operand.vmem [shape: f32[2,1,64], index: 12, kind: input, shape index: {}]   ;;  %s2627_s13 = inlined_call_operand.vmem [shape: f32[2,64,32], index: 13, kind: input, shape index: {}]   ;;  %s2628_s14 = inlined_call_operand.vmem [shape: f32[2,1,32], index: 14, kind: input, shape index: {}]   ;;  %s2629_s15 = inlined_call_operand.vmem [shape: f32[2,1,32], index: 15, kind: input, shape index: {}]   ;;  %s2630_s16 = inlined_call_operand.vmem [shape: f32[2,1,32], index: 16, kind: input, shape index: {}]   ;;  %s2631_s17 = inlined_call_operand.hbm [shape: f32[16,32], index: 17, kind: output, shape index: {0}]   ;;  %s2632_s18 = inlined_call_operand.vmem [shape: f32[2,8,128], index: 18, kind: output, shape index: {1}]  }
   0x1   :  { %2638 = sst [smem:[#allocation7_spill]] %s2614_s0 }
   0x2   :  { %2639 = sst [smem:[#allocation8_spill]] %s2615_s1 }
   0x3   :  { %2640 = sst [smem:[#allocation9_spill]] %s2616_s2 }
   0x4   :  { %2641 = sst [smem:[#allocation10_spill]] %s2617_s3 }
   0x5   :  { %2642 = sst [smem:[#allocation11_spill]] %s2618_s4 }
   0x6   :  { %2643 = sst [smem:[#allocation12_spill]] %s2619_s5 }
   0x7   :  { %2644 = sst [smem:[#allocation13_spill]] %s2621_s7 }
   0x8   :  { %2645 = sst [smem:[#allocation14_spill]] %s2625_s11 }
   0x9   :  { %2646 = sst [smem:[#allocation15_spill]] %s2631_s17 }
   0xa   :  { %24 = vsyncpa [#allocation3], 0  ;;  %s2171_s27 = smov 0  }
   0xb LB: > { %2647 = sst [smem:[#allocation5_spill]] %s2059_s27  ;;  %s2177_s28 = sadd.s32 4294967295, %s2059_s27   ;;  %s2059_s27 = sphi %s2171_s27, %s30_s27  }
   0xc   : > { %p1855_p0 = scmp.ge.s32.totalorder %s2059_s27, 1  ;;  %p605_p1 = scmp.lt.s32.totalorder %s2059_s27, 3 }
   0xe   : > { %p606_p2 = pnand %p1855_p0, %p605_p1 }
  0x10   : > { %609 = sbr.rel (%p606_p2) target bundleno = 2384 (0x950), region = 88 }
  0x15   : > { %p697_p3 = scmp.lt.s32.totalorder %s2177_s28, 1  ;;  %s2648_s5 = sld [smem:[#allocation12_spill]] }
  0x16   : > { %s2649_s7 = sld [smem:[#allocation13_spill]]  ;;  %p1865_p4 = scmp.ne.s32.totalorder %s2177_s28, 0 }
  0x17   : > { %s2183_s29 = scalar_select %p697_p3, %s2177_s28, 1 }
  0x18   : > { %s2651_s11 = sld [smem:[#allocation14_spill]] }
  0x19   : > { %s1902_s30 = sshll.u32 %s2183_s29, 5  ;;  %s734_s0 = scalar_lea.vmem %s2628_s14, %s2183_s29 }
  0x1a   : > { %s737_s20 = scalar_lea.vmem %s2629_s15, %s2183_s29  ;;  %s740_s3 = scalar_lea.vmem %s2630_s16, %s2183_s29 }
  0x1b   : > { %s2193_s22 = scalar_lea.vmem %s2648_s5, %s1902_s30  ;;  %s1864_s2 = sshll.u32 %s2183_s29, 3 }
  0x1c   : > { %s2198_s24 = scalar_lea.vmem %s2649_s7, %s1902_s30  ;;  %748 = sbr.rel (%p1865_p4) target bundleno = 318 (0x13e), region = 92 }
  0x1d   : > { %2650 = sst [smem:[#allocation6_spill]] %s2198_s24  ;;  %s1905_s24 = sshll.u32 %s2183_s29, 6 }
  0x1e   : > { %s2215_s5 = scalar_lea.vmem %s2651_s11, %s1902_s30  ;;  %s2225_s27 = scalar_lea.vmem %s2627_s13, %s1905_s24 }
  0x1f   : > { %s2243_s11 = scalar_lea.vmem %s2632_s18, %s1864_s2  ;;  %s2652_s26 = sld [smem:[#allocation7_spill]] (!%p1865_p4) }
  0x20   : > { %s2653_s17 = sld [smem:[#allocation8_spill]] (!%p1865_p4) }
  0x21   : > { %vm757_vm0 = vcmask 261120   ;;  %v2061_v8 = vmov 32.0   ;;  %s2654_s24 = sld [smem:[#allocation10_spill]] }
  0x22   : > { %1937 = vrcp.f32 %v2061_v8  ;;  %s2655_s1 = sld [smem:[#allocation11_spill]] }
  0x25   : > { %v749_v0 = vld [vmem:[%s2652_s26] sm:$0xff]  ;;  %v750_v3 = vld [vmem:[%s2652_s26 + $0x8] sm:$0xff] }
  0x26   : > { %v751_v1 = vld [vmem:[%s2653_s17] sm:$0xff]  ;;  %v752_v4 = vld [vmem:[%s2653_s17 + $0x8] sm:$0xff] }
  0x27   : > { %v753_v2 = vadd.f32 %v751_v1, %v749_v0  ;;  %v754_v6 = vadd.f32 %v752_v4, %v750_v3  ;;  %v1935_v39 = vld [vmem:[%s2654_s24] ss:$0 sm:$0xff] }
  0x28   : > { %v1938_v9 = vpop.eup %1937  ;;  %v1936_v42 = vld [vmem:[%s2655_s1] ss:$0 sm:$0xff] }
  0x29   : > { %v758_v5 = vsel %vm757_vm0, %v753_v2, 0.0  ;;  %v761_v7 = vsel %vm757_vm0, %v754_v6, 0.0  ;;  %v765_v10 = vmul.f32 32.0, %v1938_v9  ;;  %vm769_vm1 = vweird.f32 %v1938_v9 }
  0x2a   : > { %759 = vadd.xlane.f32.xlu0 %v758_v5 }
  0x2b   : > { %v766_v11 = vsub.f32 1.0, %v765_v10 }
  0x2d   : > { %v767_v12 = vmul.f32 %v1938_v9, %v766_v11 }
  0x2f   : > { %v768_v13 = vadd.f32 %v1938_v9, %v767_v12 }
  0x31   : > { %v770_v14 = vsel %vm769_vm1, %v1938_v9, %v768_v13 }
  0x32   : > { %762 = vadd.xlane.f32.xlu0 %v761_v7 }
  0x9d   : > { %v760_v15 = vpop.xlane.xlu0 %759 }
  0x9e   : > { %v771_v16 = vmul.f32 %v770_v14, %v760_v15 }
  0xa0   : > { %v773_v17 = vsub.f32 %v753_v2, %v771_v16 }
  0xa2   : > { %v775_v18 = vmul.f32 %v773_v17, %v773_v17 }
  0xa4   : > { %v777_v19 = vsel %vm757_vm0, %v775_v18, 0.0 }
  0xa5   : > { %778 = vadd.xlane.f32.xlu1 %v777_v19  ;;  %v763_v20 = vpop.xlane.xlu0 %762 }
  0xa6   : > { %v772_v21 = vmul.f32 %v770_v14, %v763_v20 }
  0xa8   : > { %v774_v22 = vsub.f32 %v754_v6, %v772_v21 }
  0xaa   : > { %v776_v23 = vmul.f32 %v774_v22, %v774_v22 }
  0xac   : > { %v780_v24 = vsel %vm757_vm0, %v776_v23, 0.0 }
  0xad   : > { %781 = vadd.xlane.f32.xlu1 %v780_v24 }
 0x118   : > { %v779_v25 = vpop.xlane.xlu1 %778 }
 0x119   : > { %v783_v26 = vmul.f32 %v779_v25, %v770_v14 }
 0x11b   : > { %v785_v27 = vadd.f32 1e-12, %v783_v26 }
 0x11d   : > { %1939 = vrsqrt.f32 %v785_v27  ;;  %vm793_vm3 = vweird.f32 %v785_v27 }
 0x120   : > { %v782_v28 = vpop.xlane.xlu1 %781 }
 0x121   : > { %v784_v29 = vmul.f32 %v782_v28, %v770_v14 }
 0x123   : > { %v1940_v30 = vpop.eup %1939  ;;  %v786_v31 = vadd.f32 1e-12, %v784_v29 }
 0x124   : > { %v788_v32 = vmul.f32 %v1940_v30, %v785_v27  ;;  %vm794_vm2 = vweird.f32 %v1940_v30 }
 0x125   : > { %1941 = vrsqrt.f32 %v786_v31  ;;  %vm795_vm4 = vmor %vm793_vm3, %vm794_vm2  ;;  %vm803_vm6 = vweird.f32 %v786_v31 }
 0x126   : > { %v789_v33 = vmul.f32 %v1940_v30, %v788_v32 }
 0x128   : > { %v790_v34 = vmul.f32 0.5, %v789_v33 }
 0x12a   : > { %v791_v35 = vsub.f32 1.5, %v790_v34 }
 0x12b   : > { %v1942_v36 = vpop.eup %1941 }
 0x12c   : > { %v792_v37 = vmul.f32 %v1940_v30, %v791_v35  ;;  %v798_v38 = vmul.f32 %v1942_v36, %v786_v31  ;;  %vm804_vm5 = vweird.f32 %v1942_v36 }
 0x12d   : > { %vm805_vm7 = vmor %vm803_vm6, %vm804_vm5 }
 0x12e   : > { %v796_v40 = vsel %vm795_vm4, %v1940_v30, %v792_v37  ;;  %v799_v41 = vmul.f32 %v1942_v36, %v798_v38 }
 0x12f   : > { %v807_v43 = vmul.f32 %v796_v40, %v773_v17 }
 0x130   : > { %v800_v44 = vmul.f32 0.5, %v799_v41 }
 0x131   : > { %v812_v45 = vmul.f32 %v1935_v39, %v807_v43 }
 0x132   : > { %v801_v46 = vsub.f32 1.5, %v800_v44 }
 0x133   : > { %v817_v47 = vadd.f32 %v1936_v42, %v812_v45 }
 0x134   : > { %v802_v48 = vmul.f32 %v1942_v36, %v801_v46 }
 0x135   : > { %819 = vst.msk [vmem:[#allocation2] sm:$0xff] %vm757_vm0, %v817_v47 }
 0x136   : > { %v806_v49 = vsel %vm805_vm7, %v1942_v36, %v802_v48 }
 0x137   : > { %v808_v50 = vmul.f32 %v806_v49, %v774_v22 }
 0x139   : > { %v813_v51 = vmul.f32 %v1935_v39, %v808_v50 }
 0x13b   : > { %v818_v52 = vadd.f32 %v1936_v42, %v813_v51 }
 0x13d   : > { %820 = vst.msk [vmem:[#allocation2 + $0x8] sm:$0xff] %vm757_vm0, %v818_v52 }
 0x13e PF: > { %v826_v53 = vld [vmem:[%s2193_s22 + $0x18] sm:$0xff]  ;;  %v825_v54 = vld [vmem:[%s2193_s22 + $0x10] sm:$0xff]  ;;  %v824_v55 = vld [vmem:[%s2193_s22 + $0x8] sm:$0xff]  ;;  %vm831_vm8 = vcmask 261120   ;;  %s2656_s7 = scalar_lea.vmem %s2620_s6, %s2183_s29  ;;  %s2063_s21 = smov 104   ;;  %vm887_vm9 = vcmask 64512  }
 0x13f   : > { %850 = vmatpush.msra.mxu0 %v826_v53  ;;  %v823_v56 = vld [vmem:[%s2193_s22] sm:$0xff]  ;;  %s2062_s22 = smov 120   ;;  %s2064_s2 = smov 112   ;;  %vm1024_vm10 = vcmask 130048   ;;  %vm1339_vm11 = vcmask 195584  }
 0x140   : > { %v2274_v57 = vld [vmem:[#allocation2] sm:$0xff]  ;;  %s2065_s23 = smov 96   ;;  %s2657_s4 = sld [smem:[#allocation9_spill]] }
 0x141   : > { %851 = vmatpush.msra.mxu0 %v825_v54  ;;  %v1963_v59 = vld [vmem:[%s2656_s7] ss:$0 sm:$0xff]  ;;  %s2066_s24 = smov 64   ;;  %s2658_s25 = sld [smem:[#allocation6_spill]] }
 0x142   : > { %s2067_s1 = smov 8   ;;  %s2068_s19 = smov 16  }
 0x143   : > { %852 = vmatpush.msra.mxu0 %v824_v55  ;;  %s2069_s30 = smov 24   ;;  %s2660_s7 = scalar_lea.vmem %s2623_s9, %s2183_s29 }
 0x144   : > { %v2278_v58 = vld [vmem:[#allocation2 + $0x8] sm:$0xff]  ;;  %p1910_p5 = scmp.eq.s32.totalorder %s2177_s28, 1 }
 0x145   : > { %853 = vmatpush.msra.mxu0 %v823_v56 }
 0x146   : > { %1866 = vmatmul.msk.f32.vlgmr.msra.gmra.mxu0 %vm831_vm8, %v2274_v57  ;;  %v879_v14 = vld [vmem:[%s2657_s4 + $0x20] sm:$0xff]  ;;  %v881_v17 = vld [vmem:[%s2657_s4 + $0x30] sm:$0xff]  ;;  %v882_v27 = vld [vmem:[%s2657_s4 + $0x38] sm:$0xff] }
 0x147   : > { %v875_v22 = vld [vmem:[%s2657_s4] sm:$0xff]  ;;  %v877_v24 = vld [vmem:[%s2657_s4 + $0x10] sm:$0xff]  ;;  %v878_v30 = vld [vmem:[%s2657_s4 + $0x18] sm:$0xff] }
 0x148   : > { %v880_v37 = vld [vmem:[%s2657_s4 + $0x28] sm:$0xff] }
 0x149   : > { %v876_v39 = vld [vmem:[%s2657_s4 + $0x8] sm:$0xff] }
 0x14e   : > { %1867 = vmatmul.msk.f32.gmra.mxu0 %vm831_vm8, %v2278_v58 }
 0x1c3   : > { %v855_v60 = vpop.f32.mrf.mxu0 }
 0x1c4   : > { %v2287_v61 = vadd.f32 %v1963_v59, %v855_v60 }
 0x1c6   : > { %863 = vrot.lane.b32.xlu1 %v2287_v61, %s2062_s22 }
 0x1cb   : > { %v858_v62 = vpop.f32.mrf.mxu0 }
 0x1cc   : > { %v2290_v63 = vadd.f32 %v1963_v59, %v858_v62 }
 0x1ce   : > { %873 = vrot.lane.b32.xlu2 %v2290_v63, %s2063_s21  ;;  %865 = vrot.lane.b32.xlu0 %v2290_v63, %s2062_s22 }
 0x1cf   : > { %867 = vrot.lane.b32.xlu1 %v2287_v61, %s2064_s2 }
 0x1d6   : > { %869 = vrot.lane.b32.xlu0 %v2290_v63, %s2064_s2  ;;  %871 = vrot.lane.b32.xlu2 %v2287_v61, %s2063_s21  ;;  %s2659_s21 = scalar_lea.vmem %s2622_s8, %s2183_s29 }
 0x228   : > { %v2299_v0 = vpop.permute.xlu2 %873 }
 0x230   : > { %v2305_v2 = vpop.permute.xlu2 %871 }
 0x238   : > { %v2301_v1 = vpop.permute.xlu1 %863 }
 0x239   : > { %919 = vrot.lane.b32.xlu2 %v2301_v1, %s2065_s23 }
 0x240   : > { %v2307_v3 = vpop.permute.xlu0 %865 }
 0x241   : > { %921 = vrot.lane.b32.xlu0 %v2307_v3, %s2065_s23  ;;  %989 = vrot.lane.b32.xlu2 %v2305_v2, %s2065_s23  ;;  %v2313_v4 = vpop.permute.xlu1 %867 }
 0x248   : > { %v2315_v5 = vpop.permute.xlu0 %869 }
 0x249   : > { %956 = vrot.lane.b32.xlu1 %v2315_v5, %s2065_s23  ;;  %954 = vrot.lane.b32.xlu0 %v2313_v4, %s2065_s23 }
 0x251   : > { %991 = vrot.lane.b32.xlu1 %v2299_v0, %s2065_s23  ;;  %885 = vrot.lane.b32.xlu0 %v2290_v63, %s2065_s23 }
 0x259   : > { %883 = vrot.lane.b32.xlu1 %v2287_v61, %s2065_s23 }
 0x293   : > { %v920_v7 = vpop.permute.xlu2 %919 }
 0x29b   : > { %v990_v12 = vpop.permute.xlu2 %989 }
 0x2b3   : > { %v922_v6 = vpop.permute.xlu0 %921 }
 0x2b4   : > { %1872 = vmatpush.xpose.msk.msra.mxu2 %vm887_vm9, %v922_v6 }
 0x2b8   : > { %1873 = vmatpush.xpose.msk.msra.mxu2 %vm887_vm9, %v920_v7 }
 0x2bb   : > { %1874 = vmatmul.msk.f32.vlgmr.msra.gmra.mxu2 %vm887_vm9, %v2301_v1  ;;  %v955_v8 = vpop.permute.xlu0 %954  ;;  %v957_v9 = vpop.permute.xlu1 %956 }
 0x2bc   : > { %1876 = vmatpush.xpose.msk.msra.mxu3 %vm887_vm9, %v957_v9 }
 0x2c0   : > { %1877 = vmatpush.xpose.msk.msra.mxu3 %vm887_vm9, %v955_v8 }
 0x2c3   : > { %1875 = vmatmul.msk.f32.gmra.mxu2 %vm887_vm9, %v2307_v3  ;;  %v886_v10 = vpop.permute.xlu0 %885  ;;  %1878 = vmatmul.msk.f32.vlgmr.msra.gmra.mxu3 %vm887_vm9, %v2313_v4  ;;  %v992_v11 = vpop.permute.xlu1 %991 }
 0x2c4   : > { %1868 = vmatpush.xpose.msk.msra.mxu1 %vm887_vm9, %v886_v10  ;;  %1880 = vmatpush.xpose.msk.msrb.mxu0 %vm887_vm9, %v992_v11 }
 0x2c8   : > { %1881 = vmatpush.xpose.msk.msrb.mxu0 %vm887_vm9, %v990_v12 }
 0x2cb   : > { %1879 = vmatmul.msk.f32.gmra.mxu3 %vm887_vm9, %v2315_v5  ;;  %1882 = vmatmul.msk.f32.vlgmr.msrb.gmra.mxu0 %vm887_vm9, %v2305_v2  ;;  %v884_v13 = vpop.permute.xlu1 %883 }
 0x2cc   : > { %1869 = vmatpush.xpose.msk.msra.mxu1 %vm887_vm9, %v884_v13 }
 0x2cf   : > { %1870 = vmatmul.msk.f32.vlgmr.msra.gmra.mxu1 %vm887_vm9, %v2287_v61 }
 0x2d3   : > { %1883 = vmatmul.msk.f32.gmra.mxu0 %vm887_vm9, %v2299_v0 }
 0x2d7   : > { %1871 = vmatmul.msk.f32.gmra.mxu1 %vm887_vm9, %v2290_v63 }
 0x33e   : > { %v948_v15 = vpop.f32.mrf.mxu2 }
 0x33f   : > { %v949_v28 = vadd.f32 %v948_v15, %v877_v24  ;;  %v1953_v24 = vpack.i.bf16 %v2305_v2, %v2299_v0 }
 0x341   : > { %v1031_v36 = vsel %vm1024_vm10, %v949_v28, -inf }
 0x346   : > { %v983_v16 = vpop.f32.mrf.mxu3  ;;  %v951_v31 = vpop.f32.mrf.mxu2 }
 0x347   : > { %v984_v18 = vadd.f32 %v983_v16, %v879_v14  ;;  %v952_v34 = vadd.f32 %v951_v31, %v878_v30 }
 0x348   : > { %v1018_v19 = vpop.f32.mrf.mxu0 }
 0x349   : > { %v1019_v20 = vadd.f32 %v1018_v19, %v881_v17  ;;  %v1037_v21 = vsel %vm1024_vm10, %v984_v18, -inf  ;;  %v1034_v43 = vsel %vm1024_vm10, %v952_v34, -inf }
 0x34a   : > { %1038 = vmax.xlane.f32.xlu0 %v1037_v21 }
 0x34b   : > { %v1043_v23 = vsel %vm1024_vm10, %v1019_v20, -inf }
 0x34c   : > { %1044 = vmax.xlane.f32.xlu2 %v1043_v23  ;;  %v913_v25 = vpop.f32.mrf.mxu1  ;;  %v1948_v23 = vpack.i.bf16 %v2313_v4, %v2301_v1 }
 0x34d   : > { %v2365_v26 = vadd.f32 %v913_v25, %v875_v22  ;;  %v1943_v25 = vpack.i.bf16 %v2315_v5, %v2307_v3 }
 0x34e   : > { %v986_v38 = vpop.f32.mrf.mxu3 }
 0x34f   : > { %v1025_v29 = vsel %vm1024_vm10, %v2365_v26, -inf  ;;  %v987_v41 = vadd.f32 %v986_v38, %v880_v37 }
 0x350   : > { %v1021_v32 = vpop.f32.mrf.mxu0  ;;  %1026 = vmax.xlane.f32.xlu1 %v1025_v29 }
 0x351   : > { %v1022_v33 = vadd.f32 %v1021_v32, %v882_v27  ;;  %v1040_v44 = vsel %vm1024_vm10, %v987_v41, -inf }
 0x353   : > { %v1046_v35 = vsel %vm1024_vm10, %v1022_v33, -inf }
 0x354   : > { %1047 = vmax.xlane.f32.xlu0 %v1046_v35  ;;  %1032 = vmax.xlane.f32.xlu2 %v1031_v36  ;;  %v916_v40 = vpop.f32.mrf.mxu1 }
 0x355   : > { %v2383_v42 = vadd.f32 %v916_v40, %v876_v39 }
 0x357   : > { %v1028_v45 = vsel %vm1024_vm10, %v2383_v42, -inf }
 0x358   : > { %1035 = vmax.xlane.f32.xlu1 %v1034_v43 }
 0x35c   : > { %1041 = vmax.xlane.f32.xlu2 %v1040_v44  ;;  %1029 = vmax.xlane.f32.xlu0 %v1028_v45 }
 0x3bd   : > { %v1039_v46 = vpop.xlane.xlu0 %1038 }
 0x3be   : > { %v1053_v47 = vsub.f32 %v984_v18, %v1039_v46 }
 0x3bf   : > { %v1045_v48 = vpop.xlane.xlu2 %1044 }
 0x3c0   : > { %v1065_v49 = vmul.f32 1.442695, %v1053_v47  ;;  %v1055_v50 = vsub.f32 %v1019_v20, %v1045_v48 }
 0x3c2   : > { %1971 = vpow2.f32 %v1065_v49  ;;  %v1069_v51 = vmul.f32 1.442695, %v1055_v50 }
 0x3c3   : > { %v1027_v52 = vpop.xlane.xlu1 %1026 }
 0x3c4   : > { %1973 = vpow2.f32 %v1069_v51  ;;  %v1049_v27 = vsub.f32 %v2365_v26, %v1027_v52 }
 0x3c6   : > { %v1057_v29 = vmul.f32 1.442695, %v1049_v27 }
 0x3c7   : > { %v1048_v53 = vpop.xlane.xlu0 %1047  ;;  %v1033_v54 = vpop.xlane.xlu2 %1032 }
 0x3c8   : > { %v2389_v55 = vpop.eup %1971  ;;  %v1056_v56 = vsub.f32 %v1022_v33, %v1048_v53  ;;  %v1051_v59 = vsub.f32 %v949_v28, %v1033_v54  ;;  %v1958_v28 = vpack.i.bf16 %v2287_v61, %v2290_v63 }
 0x3c9   : > { %v1085_v60 = vsel %vm1024_vm10, %v2389_v55, 0.0 }
 0x3ca   : > { %v2393_v62 = vpop.eup %1973  ;;  %v1071_v6 = vmul.f32 1.442695, %v1056_v56  ;;  %v1061_v7 = vmul.f32 1.442695, %v1051_v59  ;;  %1086 = vadd.xlane.f32.xlu1 %v1085_v60 }
 0x3cb   : > { %v1036_v8 = vpop.xlane.xlu1 %1035  ;;  %v1091_v9 = vsel %vm1024_vm10, %v2393_v62, 0.0 }
 0x3cc   : > { %1975 = vpow2.f32 %v1071_v6  ;;  %v1052_v10 = vsub.f32 %v952_v34, %v1036_v8  ;;  %1092 = vadd.xlane.f32.xlu0 %v1091_v9 }
 0x3cd   : > { %1977 = vpow2.f32 %v1061_v7 }
 0x3ce   : > { %v1063_v11 = vmul.f32 1.442695, %v1052_v10 }
 0x3cf   : > { %v1042_v12 = vpop.xlane.xlu2 %1041  ;;  %v1030_v4 = vpop.xlane.xlu0 %1029 }
 0x3d0   : > { %v1054_v13 = vsub.f32 %v987_v41, %v1042_v12  ;;  %1979 = vpow2.f32 %v1063_v11  ;;  %v1050_v2 = vsub.f32 %v2383_v42, %v1030_v4 }
 0x3d2   : > { %v2397_v14 = vpop.eup %1975  ;;  %v1067_v15 = vmul.f32 1.442695, %v1054_v13  ;;  %v1059_v3 = vmul.f32 1.442695, %v1050_v2 }
 0x3d3   : > { %v2399_v16 = vpop.eup %1977  ;;  %v1094_v17 = vsel %vm1024_vm10, %v2397_v14, 0.0 }
 0x3d4   : > { %1981 = vpow2.f32 %v1067_v15  ;;  %v1079_v18 = vsel %vm1024_vm10, %v2399_v16, 0.0  ;;  %1095 = vadd.xlane.f32.xlu1 %v1094_v17 }
 0x3d5   : > { %1080 = vadd.xlane.f32.xlu2 %v1079_v18  ;;  %1983 = vpow2.f32 %v1057_v29 }
 0x3d6   : > { %v2405_v19 = vpop.eup %1979  ;;  %1985 = vpow2.f32 %v1059_v3 }
 0x3d7   : > { %v1082_v22 = vsel %vm1024_vm10, %v2405_v19, 0.0 }
 0x3da   : > { %v2407_v20 = vpop.eup %1981 }
 0x3db   : > { %v1088_v21 = vsel %vm1024_vm10, %v2407_v20, 0.0  ;;  %v2426_v1 = vpop.eup %1983 }
 0x3dc   : > { %1089 = vadd.xlane.f32.xlu1 %v1088_v21  ;;  %v1073_v0 = vsel %vm1024_vm10, %v2426_v1, 0.0  ;;  %v2431_v5 = vpop.eup %1985 }
 0x3dd   : > { %1083 = vadd.xlane.f32.xlu2 %v1082_v22  ;;  %v1076_v61 = vsel %vm1024_vm10, %v2431_v5, 0.0 }
 0x3e0   : > { %1949 = vrot.lane.b32.xlu0 %v1948_v23, %s2066_s24 }
 0x3f5   : > { %1944 = vrot.lane.b32.xlu2 %v1943_v25, %s2066_s24  ;;  %1954 = vrot.lane.b32.xlu1 %v1953_v24, %s2066_s24 }
 0x3fd   : > { %1959 = vrot.lane.b32.xlu1 %v1958_v28, %s2066_s24 }
 0x40a   : > { %1074 = vadd.xlane.f32.xlu0 %v1073_v0 }
 0x41e   : > { %1077 = vadd.xlane.f32.xlu2 %v1076_v61 }
 0x43d   : > { %v1087_v63 = vpop.xlane.xlu1 %1086 }
 0x43e   : > { %1987 = vrcp.f32 %v1087_v63 }
 0x43f   : > { %v1093_v35 = vpop.xlane.xlu0 %1092 }
 0x444   : > { %v1988_v31 = vpop.eup %1987 }
 0x445   : > { %v1109_v34 = vmul.f32 %v1988_v31, %v1087_v63 }
 0x447   : > { %v1096_v26 = vpop.xlane.xlu1 %1095  ;;  %v1117_v38 = vsub.f32 2.0, %v1109_v34  ;;  %v1343_v34 = vld [vmem:[%s2658_s25 + $0x8] sm:$0xff] }
 0x448   : > { %v1081_v30 = vpop.xlane.xlu2 %1080 }
 0x449   : > { %1989 = vrcp.f32 %v1081_v30  ;;  %v1125_v42 = vmul.f32 %v1988_v31, %v1117_v38 }
 0x44b   : > { %v2436_v53 = vmul.f32 %v2389_v55, %v1125_v42 }
 0x44f   : > { %v1990_v32 = vpop.eup %1989  ;;  %v1090_v33 = vpop.xlane.xlu1 %1089 }
 0x450   : > { %v1107_v36 = vmul.f32 %v1990_v32, %v1081_v30  ;;  %v1084_v37 = vpop.xlane.xlu2 %1083  ;;  %1991 = vrcp.f32 %v1090_v33 }
 0x451   : > { %1993 = vrcp.f32 %v1084_v37 }
 0x452   : > { %v1115_v39 = vsub.f32 2.0, %v1107_v36  ;;  %1995 = vrcp.f32 %v1093_v35  ;;  %v1950_v46 = vpop.permute.xlu0 %1949 }
 0x453   : > { %v1951_v50 = vunpack.i.l.bf16 %v1950_v46  ;;  %v1952_v51 = vunpack.i.h.bf16 %v1950_v46  ;;  %1997 = vrcp.f32 %v1096_v26 }
 0x454   : > { %v1123_v43 = vmul.f32 %v1990_v32, %v1115_v39  ;;  %v1345_v32 = vld [vmem:[%s2658_s25 + $0x18] sm:$0xff] }
 0x456   : > { %v1992_v40 = vpop.eup %1991  ;;  %v2439_v54 = vmul.f32 %v2399_v16, %v1123_v43 }
 0x457   : > { %v1994_v41 = vpop.eup %1993  ;;  %v1110_v45 = vmul.f32 %v1992_v40, %v1090_v33  ;;  %v1344_v33 = vld [vmem:[%s2658_s25 + $0x10] sm:$0xff] }
 0x458   : > { %v1108_v44 = vmul.f32 %v1994_v41, %v1084_v37  ;;  %v1945_v47 = vpop.permute.xlu2 %1944  ;;  %v1996_v52 = vpop.eup %1995 }
 0x459   : > { %v1946_v48 = vunpack.i.l.bf16 %v1945_v47  ;;  %v1947_v49 = vunpack.i.h.bf16 %v1945_v47  ;;  %v1118_v59 = vsub.f32 2.0, %v1110_v45  ;;  %v1111_v60 = vmul.f32 %v1996_v52, %v1093_v35  ;;  %v1998_v55 = vpop.eup %1997  ;;  %v1342_v35 = vld [vmem:[%s2658_s25] sm:$0xff]  ;;  %s2071_s25 = smov 32  }
 0x45a   : > { %v1116_v56 = vsub.f32 2.0, %v1108_v44  ;;  %v1112_v12 = vmul.f32 %v1998_v55, %v1096_v26 }
 0x45b   : > { %1236 = vmatpush.msrb.mxu2 %v1946_v48  ;;  %1269 = vmatpush.msrb.mxu3 %v1947_v49  ;;  %v1126_v7 = vmul.f32 %v1992_v40, %v1118_v59  ;;  %v1119_v8 = vsub.f32 2.0, %v1111_v60 }
 0x45c   : > { %v1124_v6 = vmul.f32 %v1994_v41, %v1116_v56  ;;  %v1120_v18 = vsub.f32 2.0, %v1112_v12 }
 0x45d   : > { %1237 = vmatpush.msrb.mxu2 %v1951_v50  ;;  %1270 = vmatpush.msrb.mxu3 %v1952_v51  ;;  %v2449_v10 = vmul.f32 %v2407_v20, %v1126_v7  ;;  %v1127_v11 = vmul.f32 %v1996_v52, %v1119_v8  ;;  %v1964_v50 = vld [vmem:[%s2659_s21] ss:$0 sm:$0xff]  ;;  %s2072_s21 = smov 48  }
 0x45e   : > { %1886 = vmatmul.msk.f32.vlgmr.msrb.gmra.mxu2 %vm1024_vm10, %v2439_v54  ;;  %1888 = vmatmul.msk.f32.vlgmr.msrb.gmra.mxu3 %vm1024_vm10, %v2436_v53  ;;  %v2446_v9 = vmul.f32 %v2405_v19, %v1124_v6  ;;  %v1128_v19 = vmul.f32 %v1998_v55, %v1120_v18  ;;  %v2070_v55 = vmov 32.0  }
 0x45f   : > { %v2456_v17 = vmul.f32 %v2393_v62, %v1127_v11 }
 0x460   : > { %v2461_v23 = vmul.f32 %v2397_v14, %v1128_v19 }
 0x466   : > { %1887 = vmatmul.msk.f32.gmra.mxu2 %vm1024_vm10, %v2446_v9  ;;  %1889 = vmatmul.msk.f32.gmra.mxu3 %vm1024_vm10, %v2449_v10 }
 0x467   : > { %v1955_v13 = vpop.permute.xlu1 %1954 }
 0x468   : > { %v1956_v15 = vunpack.i.l.bf16 %v1955_v13  ;;  %v1957_v16 = vunpack.i.h.bf16 %v1955_v13 }
 0x46a   : > { %1302 = vmatpush.msra.mxu0 %v1956_v15 }
 0x46c   : > { %1303 = vmatpush.msra.mxu0 %v1957_v16 }
 0x46d   : > { %1890 = vmatmul.msk.f32.vlgmr.msra.gmra.mxu0 %vm1024_vm10, %v2456_v17 }
 0x46f   : > { %v1960_v20 = vpop.permute.xlu1 %1959 }
 0x470   : > { %v1961_v21 = vunpack.i.l.bf16 %v1960_v20  ;;  %v1962_v22 = vunpack.i.h.bf16 %v1960_v20 }
 0x472   : > { %1203 = vmatpush.msrb.mxu1 %v1961_v21 }
 0x474   : > { %1204 = vmatpush.msrb.mxu1 %v1962_v22 }
 0x475   : > { %1891 = vmatmul.msk.f32.gmra.mxu0 %vm1024_vm10, %v2461_v23 }
 0x476   : > { %1368 = vmatpush.msra.mxu1 %v1345_v32 }
 0x478   : > { %1369 = vmatpush.msra.mxu1 %v1344_v33 }
 0x47a   : > { %1370 = vmatpush.msra.mxu1 %v1343_v34 }
 0x47c   : > { %1371 = vmatpush.msra.mxu1 %v1342_v35 }
 0x47d   : > { %v1075_v24 = vpop.xlane.xlu0 %1074 }
 0x47e   : > { %1999 = vrcp.f32 %v1075_v24 }
 0x484   : > { %v2000_v62 = vpop.eup %1999 }
 0x485   : > { %v1105_v25 = vmul.f32 %v2000_v62, %v1075_v24 }
 0x487   : > { %v1113_v27 = vsub.f32 2.0, %v1105_v25 }
 0x489   : > { %v1121_v28 = vmul.f32 %v2000_v62, %v1113_v27 }
 0x48b   : > { %v2466_v29 = vmul.f32 %v2426_v1, %v1121_v28  ;;  %v1447_v28 = vld [vmem:[%s2215_s5 + $0x18] sm:$0xff] }
 0x48c   : > { %1470 = vmatpush.msra.mxu2 %v1447_v28 }
 0x48d   : > { %1884 = vmatmul.msk.f32.vlgmr.msrb.gmra.mxu1 %vm1024_vm10, %v2466_v29 }
 0x491   : > { %v1078_v4 = vpop.xlane.xlu2 %1077 }
 0x492   : > { %2001 = vrcp.f32 %v1078_v4 }
 0x493   : > { %2003 = vrcp.f32 %v2070_v55 }
 0x498   : > { %v2002_v14 = vpop.eup %2001 }
 0x499   : > { %v1106_v0 = vmul.f32 %v2002_v14, %v1078_v4  ;;  %v2004_v11 = vpop.eup %2003  ;;  %v1446_v4 = vld [vmem:[%s2215_s5 + $0x10] sm:$0xff] }
 0x49a   : > { %v1390_v12 = vmul.f32 32.0, %v2004_v11  ;;  %vm1394_vm12 = vweird.f32 %v2004_v11  ;;  %1471 = vmatpush.msra.mxu2 %v1446_v4  ;;  %v1562_v4 = vld [vmem:[%s2225_s27 + $0x8] sm:$0xff] }
 0x49b   : > { %v1114_v2 = vsub.f32 2.0, %v1106_v0  ;;  %v1444_v0 = vld [vmem:[%s2215_s5] sm:$0xff] }
 0x49c   : > { %v1391_v13 = vsub.f32 1.0, %v1390_v12 }
 0x49d   : > { %v1122_v3 = vmul.f32 %v2002_v14, %v1114_v2  ;;  %v1445_v14 = vld [vmem:[%s2215_s5 + $0x8] sm:$0xff]  ;;  %s2663_s5 = sld [smem:[#allocation15_spill]] }
 0x49e   : > { %v1392_v15 = vmul.f32 %v2004_v11, %v1391_v13  ;;  %1472 = vmatpush.msra.mxu2 %v1445_v14  ;;  %v1567_v13 = vld [vmem:[%s2225_s27 + $0x30] sm:$0xff]  ;;  %v1561_v14 = vld [vmem:[%s2225_s27] sm:$0xff] }
 0x49f   : > { %v2471_v61 = vmul.f32 %v2431_v5, %v1122_v3 }
 0x4a0   : > { %v1393_v16 = vadd.f32 %v2004_v11, %v1392_v15  ;;  %1473 = vmatpush.msra.mxu2 %v1444_v0 }
 0x4a1   : > { %1885 = vmatmul.msk.f32.gmra.mxu1 %vm1024_vm10, %v2471_v61 }
 0x4e1   : > { %v1239_v63 = vpop.f32.mrf.mxu2  ;;  %v1272_v1 = vpop.f32.mrf.mxu3 }
 0x4e2   : > { %1313 = vrot.lane.b32.xlu1 %v1239_v63, %s2067_s1 }
 0x4e9   : > { %v1242_v26 = vpop.f32.mrf.mxu2  ;;  %v1275_v30 = vpop.f32.mrf.mxu3 }
 0x4ea   : > { %1315 = vrot.lane.b32.xlu0 %v1242_v26, %s2067_s1  ;;  %1321 = vrot.lane.b32.xlu1 %v1272_v1, %s2068_s19  ;;  %v1305_v5 = vpop.f32.mrf.mxu0 }
 0x4eb   : > { %1323 = vrot.lane.b32.xlu2 %v1275_v30, %s2068_s19 }
 0x4f2   : > { %1329 = vrot.lane.b32.xlu1 %v1305_v5, %s2069_s30  ;;  %v1308_v31 = vpop.f32.mrf.mxu0 }
 0x4fa   : > { %1331 = vrot.lane.b32.xlu1 %v1308_v31, %s2069_s30  ;;  %s1673_s30 = sshll.u32 %s2663_s5, 4  ;;  %s1674_s30 = int_to_ptr.hbm [resolvable:$true] %s1673_s30 }
 0x50a   : > { %v1206_v38 = vpop.f32.mrf.mxu1 }
 0x51e   : > { %v1209_v44 = vpop.f32.mrf.mxu1 }
 0x545   : > { %v1324_v46 = vpop.permute.xlu2 %1323 }
 0x554   : > { %v1314_v36 = vpop.permute.xlu1 %1313 }
 0x555   : > { %v1335_v39 = vsel %vm887_vm9, %v1206_v38, %v1314_v36 }
 0x55c   : > { %v1322_v37 = vpop.permute.xlu1 %1321  ;;  %v1316_v43 = vpop.permute.xlu0 %1315 }
 0x55d   : > { %v1337_v40 = vsel %vm1024_vm10, %v1335_v39, %v1322_v37  ;;  %v1336_v45 = vsel %vm887_vm9, %v1209_v44, %v1316_v43  ;;  %v1965_v37 = vld [vmem:[%s2660_s7] ss:$0 sm:$0xff]  ;;  %s2662_s7 = scalar_lea.vmem %s2626_s12, %s2183_s29 }
 0x55e   : > { %v1338_v48 = vsel %vm1024_vm10, %v1336_v45, %v1324_v46 }
 0x564   : > { %v1330_v41 = vpop.permute.xlu1 %1329 }
 0x565   : > { %v1340_v42 = vsel %vm1339_vm11, %v1337_v40, %v1330_v41 }
 0x566   : > { %1892 = vmatmul.msk.f32.vlgmr.msra.gmra.mxu1 %vm831_vm8, %v1340_v42 }
 0x56c   : > { %v1332_v47 = vpop.permute.xlu1 %1331 }
 0x56d   : > { %v1341_v49 = vsel %vm1339_vm11, %v1338_v48, %v1332_v47 }
 0x56e   : > { %1893 = vmatmul.msk.f32.gmra.mxu1 %vm831_vm8, %v1341_v49 }
 0x5e3   : > { %v1373_v51 = vpop.f32.mrf.mxu1 }
 0x5e4   : > { %v1374_v52 = vadd.f32 %v1964_v50, %v1373_v51  ;;  %v1967_v51 = vld [vmem:[%s2662_s7] ss:$0 sm:$0xff]  ;;  %s2075_s7 = smov 128  }
 0x5e6   : > { %v1379_v56 = vadd.f32 %v1374_v52, %v2274_v57  ;;  %v2498_v57 = vsel %vm1394_vm12, %v2004_v11, %v1393_v16  ;;  %v1568_v11 = vld [vmem:[%s2225_s27 + $0x38] sm:$0xff]  ;;  %v1566_v16 = vld [vmem:[%s2225_s27 + $0x28] sm:$0xff] }
 0x5e7   : > { %1587 = vmatpush.msra.mxu3 %v1568_v11 }
 0x5e8   : > { %v1383_v59 = vsel %vm831_vm8, %v1379_v56, 0.0 }
 0x5e9   : > { %1384 = vadd.xlane.f32.xlu1 %v1383_v59  ;;  %1588 = vmatpush.msra.mxu3 %v1567_v13 }
 0x5eb   : > { %v1376_v60 = vpop.f32.mrf.mxu1  ;;  %1589 = vmatpush.msra.mxu3 %v1566_v16 }
 0x5ec   : > { %v1377_v6 = vadd.f32 %v1964_v50, %v1376_v60 }
 0x5ee   : > { %v1380_v7 = vadd.f32 %v1377_v6, %v2278_v58 }
 0x5f0   : > { %v1386_v8 = vsel %vm831_vm8, %v1380_v7, 0.0 }
 0x5f1   : > { %1387 = vadd.xlane.f32.xlu0 %v1386_v8 }
 0x65c   : > { %v1385_v18 = vpop.xlane.xlu1 %1384 }
 0x65d   : > { %v1396_v19 = vmul.f32 %v2498_v57, %v1385_v18 }
 0x65f   : > { %v1398_v20 = vsub.f32 %v1379_v56, %v1396_v19 }
 0x661   : > { %v1400_v58 = vmul.f32 %v1398_v20, %v1398_v20 }
 0x663   : > { %v1402_v21 = vsel %vm831_vm8, %v1400_v58, 0.0 }
 0x664   : > { %v1388_v22 = vpop.xlane.xlu0 %1387  ;;  %1403 = vadd.xlane.f32.xlu2 %v1402_v21 }
 0x665   : > { %v1397_v24 = vmul.f32 %v2498_v57, %v1388_v22  ;;  %v1564_v22 = vld [vmem:[%s2225_s27 + $0x18] sm:$0xff] }
 0x667   : > { %v1399_v62 = vsub.f32 %v1380_v7, %v1397_v24 }
 0x669   : > { %v1401_v25 = vmul.f32 %v1399_v62, %v1399_v62 }
 0x66b   : > { %v1405_v27 = vsel %vm831_vm8, %v1401_v25, 0.0  ;;  %v1563_v25 = vld [vmem:[%s2225_s27 + $0x10] sm:$0xff] }
 0x66c   : > { %1406 = vadd.xlane.f32.xlu1 %v1405_v27 }
 0x67c   : > { %1142 = vrot.lane.b32.xlu2 %v2439_v54, %s2071_s25  ;;  %s2661_s25 = scalar_lea.vmem %s2624_s10, %s2183_s29 }
 0x67d   : > { %v1966_v41 = vld [vmem:[%s2661_s25] ss:$0 sm:$0xff] }
 0x6d7   : > { %v1404_v2 = vpop.xlane.xlu2 %1403 }
 0x6d8   : > { %v1408_v3 = vmul.f32 %v1404_v2, %v2498_v57 }
 0x6da   : > { %v1410_v63 = vadd.f32 1e-12, %v1408_v3 }
 0x6dc   : > { %2005 = vrsqrt.f32 %v1410_v63  ;;  %vm1418_vm14 = vweird.f32 %v1410_v63 }
 0x6df   : > { %v1407_v1 = vpop.xlane.xlu1 %1406 }
 0x6e0   : > { %v1409_v26 = vmul.f32 %v1407_v1, %v2498_v57 }
 0x6e2   : > { %v2006_v30 = vpop.eup %2005  ;;  %v1411_v5 = vadd.f32 1e-12, %v1409_v26 }
 0x6e3   : > { %v1413_v54 = vmul.f32 %v2006_v30, %v1410_v63  ;;  %vm1419_vm13 = vweird.f32 %v2006_v30 }
 0x6e4   : > { %2007 = vrsqrt.f32 %v1411_v5  ;;  %vm1420_vm15 = vmor %vm1418_vm14, %vm1419_vm13  ;;  %vm1428_vm1 = vweird.f32 %v1411_v5  ;;  %vm1169_vm14 = vcmask 523264  }
 0x6e5   : > { %v1414_v31 = vmul.f32 %v2006_v30, %v1413_v54 }
 0x6e7   : > { %v1415_v32 = vmul.f32 0.5, %v1414_v31 }
 0x6e9   : > { %v1416_v33 = vsub.f32 1.5, %v1415_v32 }
 0x6ea   : > { %v2008_v34 = vpop.eup %2007 }
 0x6eb   : > { %v1417_v35 = vmul.f32 %v2006_v30, %v1416_v33  ;;  %v1423_v36 = vmul.f32 %v2008_v34, %v1411_v5  ;;  %vm1429_vm0 = vweird.f32 %v2008_v34 }
 0x6ec   : > { %vm1430_vm2 = vmor %vm1428_vm1, %vm1429_vm0 }
 0x6ed   : > { %v1421_v38 = vsel %vm1420_vm15, %v2006_v30, %v1417_v35  ;;  %v1424_v39 = vmul.f32 %v2008_v34, %v1423_v36 }
 0x6ee   : > { %v1432_v40 = vmul.f32 %v1421_v38, %v1398_v20  ;;  %v1565_v20 = vld [vmem:[%s2225_s27 + $0x20] sm:$0xff] }
 0x6ef   : > { %v1425_v42 = vmul.f32 0.5, %v1424_v39  ;;  %1590 = vmatpush.msra.mxu3 %v1565_v20 }
 0x6f0   : > { %v1437_v43 = vmul.f32 %v1965_v37, %v1432_v40 }
 0x6f1   : > { %v1426_v44 = vsub.f32 1.5, %v1425_v42  ;;  %1591 = vmatpush.msra.mxu3 %v1564_v22 }
 0x6f2   : > { %v2521_v45 = vadd.f32 %v1966_v41, %v1437_v43 }
 0x6f3   : > { %v1427_v46 = vmul.f32 %v2008_v34, %v1426_v44  ;;  %1592 = vmatpush.msra.mxu3 %v1563_v25 }
 0x6f4   : > { %1894 = vmatmul.msk.f32.vlgmr.msra.gmra.mxu2 %vm831_vm8, %v2521_v45 }
 0x6f5   : > { %v1431_v47 = vsel %vm1430_vm2, %v2008_v34, %v1427_v46  ;;  %1593 = vmatpush.msra.mxu3 %v1562_v4 }
 0x6f6   : > { %v1433_v48 = vmul.f32 %v1431_v47, %v1399_v62 }
 0x6f7   : > { %1594 = vmatpush.msra.mxu3 %v1561_v14 }
 0x6f8   : > { %v1438_v49 = vmul.f32 %v1965_v37, %v1433_v48 }
 0x6fa   : > { %v2525_v50 = vadd.f32 %v1966_v41, %v1438_v49 }
 0x6fc   : > { %1895 = vmatmul.msk.f32.gmra.mxu2 %vm831_vm8, %v2525_v50 }
 0x777   : > { %v1475_v52 = vpop.f32.mrf.mxu2 }
 0x778   : > { %v2534_v56 = vadd.f32 %v1967_v51, %v1475_v52 }
 0x77a   : > { %v2537_v59 = vmul.f32 0.70710677, %v2534_v56  ;;  %v1481_v22 = vmul.f32 0.5, %v2534_v56  ;;  %v1968_v56 = vld [vmem:[%s734_s0] ss:$0 sm:$0xff]  ;;  %s2073_s0 = smov 80  }
 0x77c   : > { %v1485_v60 = vand.u32 2147483647, %v2537_v59  ;;  %v1539_v26 = vsub.f32 0.0, %v2537_v59  ;;  %vm1551_vm13 = vcmp.ge.f32.partialorder %v2537_v59, 0.0 }
 0x77e   : > { %v1487_v6 = vmul.f32 0.3275911, %v1485_v60  ;;  %v1541_v33 = vmul.f32 %v1539_v26, %v2537_v59 }
 0x77f   : > { %v1478_v7 = vpop.f32.mrf.mxu2 }
 0x780   : > { %v1489_v8 = vadd.f32 1.0, %v1487_v6  ;;  %v2540_v55 = vadd.f32 %v1967_v51, %v1478_v7  ;;  %v1543_v40 = vmul.f32 1.442695, %v1541_v33 }
 0x782   : > { %2009 = vrcp.f32 %v1489_v8  ;;  %v2544_v12 = vmul.f32 0.70710677, %v2540_v55  ;;  %v1502_v62 = vand.u32 2147483648, %v1489_v8  ;;  %v1500_v28 = vand.u32 2147483647, %v1489_v8 }
 0x783   : > { %vm1496_vm4 = vweird.f32 %v1489_v8  ;;  %v1482_v59 = vmul.f32 0.5, %v2540_v55 }
 0x784   : > { %v1486_v15 = vand.u32 2147483647, %v2544_v12  ;;  %v1503_v2 = vor.u32 1.1754944e-38, %v1502_v62  ;;  %vm1501_vm6 = vcmp.eq.f32.partialorder %v1500_v28, 8.507059e+37  ;;  %v1540_v43 = vsub.f32 0.0, %v2544_v12 }
 0x785   : > { %vm1552_vm15 = vcmp.ge.f32.partialorder %v2544_v12, 0.0 }
 0x786   : > { %v1488_v18 = vmul.f32 0.3275911, %v1486_v15  ;;  %v1542_v51 = vmul.f32 %v1540_v43, %v2544_v12 }
 0x788   : > { %v2010_v19 = vpop.eup %2009  ;;  %v1490_v21 = vadd.f32 1.0, %v1488_v18 }
 0x789   : > { %v1492_v58 = vmul.f32 %v2010_v19, %v1489_v8  ;;  %vm1497_vm3 = vweird.f32 %v2010_v19  ;;  %v1545_v8 = vmul.f32 1.442695, %v1542_v51 }
 0x78a   : > { %2011 = vrcp.f32 %v1490_v21  ;;  %vm1498_vm5 = vmor %vm1496_vm4, %vm1497_vm3  ;;  %v1517_v32 = vand.u32 2147483648, %v1490_v21  ;;  %v1515_v35 = vand.u32 2147483647, %v1490_v21  ;;  %vm1511_vm9 = vweird.f32 %v1490_v21 }
 0x78b   : > { %v1493_v24 = vsub.f32 1.0, %v1492_v58  ;;  %2013 = vpow2.f32 %v1543_v40  ;;  %vm1167_vm3 = vcmask 392192  }
 0x78c   : > { %v1518_v39 = vor.u32 1.1754944e-38, %v1517_v32  ;;  %vm1516_vm12 = vcmp.eq.f32.partialorder %v1515_v35, 8.507059e+37  ;;  %2015 = vpow2.f32 %v1545_v8 }
 0x78d   : > { %v1494_v27 = vmul.f32 %v2010_v19, %v1493_v24 }
 0x78f   : > { %v1495_v0 = vadd.f32 %v2010_v19, %v1494_v27 }
 0x790   : > { %v2012_v3 = vpop.eup %2011 }
 0x791   : > { %v1499_v63 = vsel %vm1498_vm5, %v2010_v19, %v1495_v0  ;;  %v1507_v30 = vmul.f32 %v2012_v3, %v1490_v21  ;;  %vm1512_vm7 = vweird.f32 %v2012_v3  ;;  %v2014_v11 = vpop.eup %2013  ;;  %vm1171_vm5 = vcmask 654336  }
 0x792   : > { %v1504_v1 = vsel %vm1501_vm6, %v1503_v2, %v1499_v63  ;;  %vm1513_vm11 = vmor %vm1511_vm9, %vm1512_vm7  ;;  %v2016_v25 = vpop.eup %2015  ;;  %vm1173_vm7 = vcmask 785408   ;;  %vm1175_vm9 = vcmask 916480  }
 0x793   : > { %v1521_v5 = vmul.f32 1.0614054, %v1504_v1  ;;  %v1508_v54 = vsub.f32 1.0, %v1507_v30 }
 0x795   : > { %v1523_v31 = vadd.f32 -1.4531521, %v1521_v5  ;;  %v1509_v34 = vmul.f32 %v2012_v3, %v1508_v54 }
 0x797   : > { %v1525_v36 = vmul.f32 %v1523_v31, %v1504_v1  ;;  %v1510_v37 = vadd.f32 %v2012_v3, %v1509_v34 }
 0x799   : > { %v1527_v38 = vadd.f32 1.4214138, %v1525_v36  ;;  %v1514_v41 = vsel %vm1513_vm11, %v2012_v3, %v1510_v37 }
 0x79a   : > { %v1519_v44 = vsel %vm1516_vm12, %v1518_v39, %v1514_v41 }
 0x79b   : > { %v1529_v42 = vmul.f32 %v1527_v38, %v1504_v1  ;;  %v1522_v46 = vmul.f32 1.0614054, %v1519_v44 }
 0x79d   : > { %v1531_v47 = vadd.f32 -0.28449672, %v1529_v42  ;;  %v1524_v48 = vadd.f32 -1.4531521, %v1522_v46 }
 0x79f   : > { %v1533_v49 = vmul.f32 %v1531_v47, %v1504_v1  ;;  %v1526_v52 = vmul.f32 %v1524_v48, %v1519_v44 }
 0x7a1   : > { %v1535_v60 = vadd.f32 0.2548296, %v1533_v49  ;;  %v1528_v6 = vadd.f32 1.4214138, %v1526_v52  ;;  %v1969_v52 = vld [vmem:[%s737_s20] ss:$0 sm:$0xff] }
 0x7a3   : > { %v1537_v7 = vmul.f32 %v1535_v60, %v1504_v1  ;;  %v1530_v13 = vmul.f32 %v1528_v6, %v1519_v44  ;;  %v1970_v6 = vld [vmem:[%s740_s3] ss:$0 sm:$0xff]  ;;  %s2074_s3 = smov [#allocation2]  }
 0x7a4   : > { %s1671_s29 = sshll.u32 %s2074_s3, 4  ;;  %s1672_s29 = int_to_ptr.vmem [resolvable:$true] %s1671_s29 }
 0x7a5   : > { %v1547_v15 = vmul.f32 %v2014_v11, %v1537_v7  ;;  %v1532_v16 = vadd.f32 -0.28449672, %v1530_v13 }
 0x7a7   : > { %v1549_v18 = vsub.f32 1.0, %v1547_v15  ;;  %v1534_v19 = vmul.f32 %v1532_v16, %v1519_v44 }
 0x7a9   : > { %v1553_v20 = vsub.f32 0.0, %v1549_v18  ;;  %v1536_v58 = vadd.f32 0.2548296, %v1534_v19 }
 0x7ab   : > { %v1555_v21 = vsel %vm1551_vm13, %v1549_v18, %v1553_v20  ;;  %v1538_v62 = vmul.f32 %v1536_v58, %v1519_v44 }
 0x7ac   : > { %v1557_v24 = vadd.f32 1.0, %v1555_v21 }
 0x7ad   : > { %v1548_v28 = vmul.f32 %v2016_v25, %v1538_v62 }
 0x7ae   : > { %v1559_v27 = vmul.f32 %v1557_v24, %v1481_v22 }
 0x7af   : > { %v1550_v4 = vsub.f32 1.0, %v1548_v28 }
 0x7b0   : > { %1896 = vmatmul.msk.f32.vlgmr.msra.gmra.mxu3 %vm1169_vm14, %v1559_v27 }
 0x7b1   : > { %v1554_v14 = vsub.f32 0.0, %v1550_v4 }
 0x7b3   : > { %v1556_v0 = vsel %vm1552_vm15, %v1550_v4, %v1554_v14 }
 0x7b4   : > { %v1558_v2 = vadd.f32 1.0, %v1556_v0 }
 0x7b6   : > { %v1560_v3 = vmul.f32 %v1558_v2, %v1482_v59 }
 0x7b8   : > { %1897 = vmatmul.msk.f32.gmra.mxu3 %vm1169_vm14, %v1560_v3 }
 0x833   : > { %v1596_v63 = vpop.f32.mrf.mxu3 }
 0x834   : > { %v1597_v1 = vadd.f32 %v1968_v56, %v1596_v63 }
 0x836   : > { %v1602_v26 = vadd.f32 %v1597_v1, %v2521_v45 }
 0x838   : > { %v1606_v30 = vsel %vm831_vm8, %v1602_v26, 0.0 }
 0x839   : > { %1607 = vadd.xlane.f32.xlu1 %v1606_v30 }
 0x83b   : > { %v1599_v12 = vpop.f32.mrf.mxu3 }
 0x83c   : > { %v1600_v5 = vadd.f32 %v1968_v56, %v1599_v12 }
 0x83e   : > { %v1603_v55 = vadd.f32 %v1600_v5, %v2525_v50 }
 0x840   : > { %v1609_v54 = vsel %vm831_vm8, %v1603_v55, 0.0 }
 0x841   : > { %1610 = vadd.xlane.f32.xlu0 %v1609_v54 }
 0x852   : > { %1146 = vrot.lane.b32.xlu1 %v2446_v9, %s2072_s21 }
 0x855   : > { %1138 = vrot.lane.b32.xlu0 %v2471_v61, %s2068_s19 }
 0x85d   : > { %1150 = vrot.lane.b32.xlu0 %v2436_v53, %s2066_s24  ;;  %v1143_v53 = vpop.permute.xlu2 %1142 }
 0x865   : > { %1154 = vrot.lane.b32.xlu0 %v2449_v10, %s2073_s0 }
 0x8ac   : > { %v1608_v45 = vpop.xlane.xlu1 %1607 }
 0x8ad   : > { %v1612_v31 = vmul.f32 %v1608_v45, %v2498_v57 }
 0x8af   : > { %v1614_v32 = vsub.f32 %v1602_v26, %v1612_v31 }
 0x8b1   : > { %v1616_v50 = vmul.f32 %v1614_v32, %v1614_v32 }
 0x8b3   : > { %v1618_v33 = vsel %vm831_vm8, %v1616_v50, 0.0 }
 0x8b4   : > { %1619 = vadd.xlane.f32.xlu2 %v1618_v33  ;;  %v1611_v34 = vpop.xlane.xlu0 %1610 }
 0x8b5   : > { %v1613_v9 = vmul.f32 %v1611_v34, %v2498_v57 }
 0x8b7   : > { %v1615_v35 = vsub.f32 %v1603_v55, %v1613_v9 }
 0x8b9   : > { %v1617_v36 = vmul.f32 %v1615_v35, %v1615_v35 }
 0x8bb   : > { %v1621_v61 = vsel %vm831_vm8, %v1617_v36, 0.0 }
 0x8bc   : > { %1622 = vadd.xlane.f32.xlu1 %v1621_v61 }
 0x8c4   : > { %v1147_v37 = vpop.permute.xlu1 %1146 }
 0x8c7   : > { %v1139_v40 = vpop.permute.xlu0 %1138 }
 0x8c8   : > { %v1165_v11 = vsel %vm1024_vm10, %v2466_v29, %v1139_v40 }
 0x8c9   : > { %v1166_v16 = vsel %vm831_vm8, %v1165_v11, %v1143_v53 }
 0x8ca   : > { %v1168_v21 = vsel %vm1167_vm3, %v1166_v16, %v1147_v37 }
 0x8cc   : > { %1158 = vrot.lane.b32.xlu2 %v2456_v17, %s2065_s23 }
 0x8cf   : > { %v1151_v48 = vpop.permute.xlu0 %1150 }
 0x8d0   : > { %v1170_v29 = vsel %vm1169_vm14, %v1168_v21, %v1151_v48 }
 0x8d5   : > { %1162 = vrot.lane.b32.xlu1 %v2461_v23, %s2064_s2 }
 0x8d7   : > { %v1155_v20 = vpop.permute.xlu0 %1154 }
 0x8d8   : > { %v1172_v62 = vsel %vm1171_vm5, %v1170_v29, %v1155_v20 }
 0x927   : > { %v1620_v10 = vpop.xlane.xlu2 %1619 }
 0x928   : > { %v1624_v38 = vmul.f32 %v1620_v10, %v2498_v57 }
 0x92a   : > { %v1626_v39 = vadd.f32 1e-12, %v1624_v38 }
 0x92c   : > { %2017 = vrsqrt.f32 %v1626_v39  ;;  %vm1634_vm1 = vweird.f32 %v1626_v39 }
 0x92f   : > { %v1623_v41 = vpop.xlane.xlu1 %1622  ;;  %v1159_v22 = vpop.permute.xlu2 %1158 }
 0x930   : > { %v1625_v42 = vmul.f32 %v1623_v41, %v2498_v57  ;;  %v1174_v27 = vsel %vm1173_vm7, %v1172_v62, %v1159_v22 }
 0x932   : > { %v2018_v43 = vpop.eup %2017  ;;  %v1627_v46 = vadd.f32 1e-12, %v1625_v42 }
 0x933   : > { %v1629_v44 = vmul.f32 %v2018_v43, %v1626_v39  ;;  %vm1635_vm0 = vweird.f32 %v2018_v43 }
 0x934   : > { %2019 = vrsqrt.f32 %v1627_v46  ;;  %vm1636_vm2 = vmor %vm1634_vm1, %vm1635_vm0  ;;  %vm1644_vm6 = vweird.f32 %v1627_v46 }
 0x935   : > { %v1630_v17 = vmul.f32 %v2018_v43, %v1629_v44 }
 0x937   : > { %v1631_v47 = vmul.f32 0.5, %v1630_v17 }
 0x939   : > { %v1632_v23 = vsub.f32 1.5, %v1631_v47 }
 0x93a   : > { %v2020_v49 = vpop.eup %2019 }
 0x93b   : > { %v1633_v51 = vmul.f32 %v2018_v43, %v1632_v23  ;;  %v1639_v57 = vmul.f32 %v2020_v49, %v1627_v46  ;;  %vm1645_vm4 = vweird.f32 %v2020_v49 }
 0x93c   : > { %vm1646_vm10 = vmor %vm1644_vm6, %vm1645_vm4 }
 0x93d   : > { %v1637_v60 = vsel %vm1636_vm2, %v2018_v43, %v1633_v51  ;;  %v1640_v8 = vmul.f32 %v2020_v49, %v1639_v57 }
 0x93e   : > { %v1648_v7 = vmul.f32 %v1637_v60, %v1614_v32 }
 0x93f   : > { %v1641_v15 = vmul.f32 0.5, %v1640_v8 }
 0x940   : > { %v1653_v13 = vmul.f32 %v1969_v52, %v1648_v7 }
 0x941   : > { %v1642_v19 = vsub.f32 1.5, %v1641_v15 }
 0x942   : > { %v1658_v18 = vadd.f32 %v1970_v6, %v1653_v13 }
 0x943   : > { %v1643_v58 = vmul.f32 %v2020_v49, %v1642_v19 }
 0x944   : > { %1660 = vst.msk [vmem:[#allocation2] sm:$0xff] %vm831_vm8, %v1658_v18 }
 0x945   : > { %v1647_v24 = vsel %vm1646_vm10, %v2020_v49, %v1643_v58 }
 0x946   : > { %v1649_v25 = vmul.f32 %v1647_v24, %v1615_v35 }
 0x947   : > { %v1163_v28 = vpop.permute.xlu1 %1162 }
 0x948   : > { %v1654_v4 = vmul.f32 %v1969_v52, %v1649_v25  ;;  %v1176_v14 = vsel %vm1175_vm9, %v1174_v27, %v1163_v28 }
 0x949   : > { %1177 = vst [vmem:[%s2243_s11] sm:$0xff] %v1176_v14 }
 0x94a   : > { %v1659_v0 = vadd.f32 %v1970_v6, %v1654_v4 }
 0x94c   : > { %1661 = vst.msk [vmem:[#allocation2 + $0x8] sm:$0xff] %vm831_vm8, %v1659_v0 }
 0x94d   : > { %1907 = dma.vmem_to_hbm [thread:$0]  (%p1910_p5), %s1672_s29, 256, %s1674_s30, [#allocation3], %s2075_s7, %s2075_s7, %s2067_s1  }
 0x94e   : > { %2054 = dma.done.wait (%p1910_p5), [#allocation3], 256  }
 0x94f   : > { %2056 = vsyncadd (%p1910_p5), [#allocation3], 4294967040 }
 0x950 PF: > { %s2664_s27 = sld [smem:[#allocation5_spill]] }
 0x956   : > { %s30_s27 = sadd.s32 1, %s2664_s27  }
 0x957   : > { %p27_p6 = scmp.ge.s32.totalorder %s30_s27, 4  }
 0x959   :  { %29 = sbr.rel (!%p27_p6) target bundleno = 11 (0xb), region = 164 }
 0x95e   :  { %1700 = vsyncpa [#allocation3], 1 }
 0x95f   :  { %1702 = vsyncpa [#allocation3 + $0x1], 1 }

</bundles_post_ra>
